<compile_context>
chip_gen: v7x
topology: tpu7x:2x2x1
jax: 0.10.0
libtpu: 0.0.40
codegen_flags: <defaults>
</compile_context>

<pallas_src>
import functools

import numpy as np
import jax
import jax.numpy as jnp
from jax.experimental import pallas as pl
from jax.experimental.pallas import tpu as pltpu

NUM_HEADS = 2          # GATConv heads
NEG_INF = -1e30


def _round_up(v, m):
    return -(-v // m) * m


# ----------------------------------------------------------------------------
# Fused per-layer Pallas kernel
# ----------------------------------------------------------------------------
def fused_layer_kernel(x_ref, y_ref, adj_ref, ew_ref,
                       wx_ref, asx_ref, adxT_ref, bx_ref,
                       wy_ref, asy_ref, adyT_ref, by_ref,
                       w1_ref, b1_ref, w2_ref, wm_ref, bm_ref,
                       ae_ref, out_ref, *, apply_relu):
    n_dst = adj_ref.shape[0]
    adj = adj_ref[...]                       # [n_dst, n_src] 1/0 mask (self loops in)
    edge_mask = adj > 0.0

    def gat_view(inp, w_ref_, asrc_ref_, adstT_ref_, bias_ref_, edge_term):
        # Shared src/dst projection; dst rows are a prefix slice of the src rows.
        hs = jnp.dot(inp, w_ref_[...],
                     preferred_element_type=jnp.float32)            # [n_src, H*C]
        C = hs.shape[1] // NUM_HEADS
        hd = hs[:n_dst, :]                                          # [n_dst, H*C]
        # alpha_src for BOTH heads in one contraction (block-diag att): [H, n_src]
        a_src = jax.lax.dot_general(asrc_ref_[...], hs, (((1,), (1,)), ((), ())),
                                    preferred_element_type=jnp.float32)
        # alpha_dst for both heads: [n_dst, H]
        a_dst = jnp.dot(hd, adstT_ref_[...], preferred_element_type=jnp.float32)

        ps = []
        for h in range(NUM_HEADS):                   # static unroll over heads
            score = a_dst[:, h:h + 1] + a_src[h:h + 1, :]
            et = edge_term(h)
            if et is not None:
                score = score + et
            score = jnp.where(score >= 0.0, score, 0.2 * score)     # leaky_relu(0.2)
            score = jnp.where(edge_mask, score, NEG_INF)            # mask non-edges
            m = jnp.max(score, axis=1, keepdims=True)
            e = jnp.where(edge_mask, jnp.exp(score - m), 0.0)
            denom = jnp.maximum(jnp.sum(e, axis=1, keepdims=True), 1e-30)
            ps.append(e * pl.reciprocal(denom, approx=True))        # softmax (EUP div)

        # Single wide aggregation matmul across both heads: K = H * n_src.
        p_cat = jnp.concatenate(ps, axis=1).astype(jnp.bfloat16)    # [n_dst, H*n_src]
        hs_stack = jnp.concatenate(
            [hs[:, h * C:(h + 1) * C] for h in range(NUM_HEADS)],
            axis=0).astype(jnp.bfloat16)                            # [H*n_src, C]
        acc = jnp.dot(p_cat, hs_stack, preferred_element_type=jnp.float32)
        return acc * (1.0 / NUM_HEADS) + bias_ref_[...]             # mean heads + bias

    ew = ew_ref[...]                                                # label-view only
    emb_adj = gat_view(x_ref[...], wx_ref, asx_ref, adxT_ref, bx_ref,
                       lambda h: None)
    emb_lab = gat_view(y_ref[...], wy_ref, asy_ref, adyT_ref, by_ref,
                       lambda h: ew * ae_ref[h])                    # SMEM scalar

    # ----- 2-view attention fusion: one stacked matmul over both views ------
    emb2 = jnp.concatenate([emb_adj, emb_lab], axis=0)              # [2*n_dst, C]
    t = jnp.tanh(jnp.dot(emb2, w1_ref[...], preferred_element_type=jnp.float32)
                 + b1_ref[...])
    s = jnp.sum(t * w2_ref[...], axis=1, keepdims=True)             # [2*n_dst, 1]
    sa = s[:n_dst, :]
    sl = s[n_dst:, :]
    m2 = jnp.maximum(sa, sl)                                        # softmax over 2 views
    e1 = jnp.exp(sa - m2)
    e2 = jnp.exp(sl - m2)
    inv = pl.reciprocal(e1 + e2, approx=True)
    x_new = (e1 * emb_adj + e2 * emb_lab) * inv
    if apply_relu:
        x_new = jnp.maximum(x_new, 0.0)
        # TODO(synk): training-mode dropout not applied (eval semantics: identity).

    logits = jnp.dot(x_new, wm_ref[...],
                     preferred_element_type=jnp.float32) + bm_ref[...]
    z = jnp.exp(-jnp.abs(logits))                                   # stable sigmoid
    y_new = jnp.where(logits >= 0.0, 1.0, z) * pl.reciprocal(1.0 + z, approx=True)

    # ----- lane-dense packed store: [ x_new | y_new | 0-pad ] (one full write)
    hid = x_new.shape[1]
    cls = y_new.shape[1]
    pad_w = out_ref.shape[1] - hid - cls
    pieces = [x_new, y_new]
    if pad_w > 0:
        pieces.append(jnp.zeros((n_dst, pad_w), jnp.float32))
    out_ref[...] = jnp.concatenate(pieces, axis=1)


# ----------------------------------------------------------------------------
# pallas_call wrapper
# ----------------------------------------------------------------------------
def fused_layer(x, y, adj, ew,
                wx, asx, adxT, bx,
                wy, asy, adyT, by,
                w1, b1, w2, wm, bm, ae_coef, *, apply_relu, out_pad):
    n_dst = adj.shape[0]
    vmem = pl.BlockSpec(memory_space=pltpu.MemorySpace.VMEM)
    smem = pl.BlockSpec(memory_space=pltpu.MemorySpace.SMEM)
    kern = functools.partial(fused_layer_kernel, apply_relu=apply_relu)
    return pl.pallas_call(
        kern,
        out_shape=jax.ShapeDtypeStruct((n_dst, out_pad), jnp.float32),
        in_specs=[vmem] * 17 + [smem],
        out_specs=vmem,
        compiler_params=pltpu.CompilerParams(vmem_limit_bytes=32 * 1024 * 1024),
    )(x, y, adj, ew, wx, asx, adxT, bx, wy, asy, adyT, by,
      w1, b1, w2, wm, bm, ae_coef)


# ----------------------------------------------------------------------------
# Params, dense graph construction (host side), jitted forward
# ----------------------------------------------------------------------------
def _block_diag(att):
    """[H, C] -> [H, H*C] block-diagonal rows (per-head attention vectors)."""
    H, C = att.shape
    bd = jnp.zeros((H, H * C), att.dtype)
    for h in range(H):
        bd = bd.at[h, h * C:(h + 1) * C].set(att[h])
    return bd


def init_params(key, in_channels, hidden, classes, num_layers, att_hidden=16):
    keys = list(jax.random.split(key, 64))
    it = iter(keys)

    def nrm(shape, scale=0.1):
        return scale * jax.random.normal(next(it), shape, jnp.float32)

    convs = []
    for i in range(num_layers):
        fin = in_channels if i == 0 else hidden
        convs.append(dict(
            W=nrm((fin, NUM_HEADS * hidden)),
            att_src=nrm((NUM_HEADS, hidden)),
            att_dst=nrm((NUM_HEADS, hidden)),
            bias=nrm((1, hidden)),
        ))

    W_edge = nrm((NUM_HEADS, hidden))     # lin_edge weight (edge_dim=1) per head
    att_edge = nrm((NUM_HEADS, hidden))
    label_conv = dict(
        W=nrm((classes, NUM_HEADS * hidden)),
        att_src=nrm((NUM_HEADS, hidden)),
        att_dst=nrm((NUM_HEADS, hidden)),
        bias=nrm((1, hidden)),
        # alpha_edge(e, h) = edge_attr(e) * sum_c(W_edge[h,c] * att_edge[h,c])
        ae_coef=jnp.sum(W_edge * att_edge, axis=1),      # [H] -> SMEM scalars
    )
    attn = dict(W1=nrm((hidden, att_hidden)),
                b1=nrm((1, att_hidden)),
                W2=nrm((1, att_hidden)))
    mlp = dict(W=nrm((hidden, classes)), b=nrm((1, classes)))
    return dict(convs=convs, label_conv=label_conv, attn=attn, mlp=mlp)


def build_dense_graph(edge_index, edge_attr, n_src, n_dst):
    """Dense adjacency + edge-attr matrices with PyG-style self loops:
    remove_self_loops -> add_self_loops(num_nodes=min(n_src, n_dst)),
    self-loop edge_attr = mean of incoming edge_attr (fill_value='mean')."""
    src = np.asarray(edge_index[0])
    dst = np.asarray(edge_index[1])
    keep = src != dst
    src, dst = src[keep], dst[keep]

    adj = np.zeros((n_dst, n_src), np.float32)
    adj[dst, src] = 1.0
    ew = np.zeros((n_dst, n_src), np.float32)

    ea = np.asarray(edge_attr)[keep, 0]
    ew[dst, src] = ea
    sums = np.zeros(n_dst, np.float64)
    cnt = np.zeros(n_dst, np.float64)
    np.add.at(sums, dst, ea)
    np.add.at(cnt, dst, 1.0)
    self_attr = np.where(cnt > 0, sums / np.maximum(cnt, 1.0), 0.0)

    num_nodes = min(n_src, n_dst)
    idx = np.arange(num_nodes)
    adj[idx, idx] = 1.0
    ew[idx, idx] = self_attr[:num_nodes]
    return jnp.asarray(adj), jnp.asarray(ew)


@jax.jit
def lflf_gat_forward(x, y, graphs, params):
    num_layers = len(params['convs'])
    hidden = params['convs'][0]['att_src'].shape[1]
    classes = params['mlp']['W'].shape[1]
    out_pad = max(128, _round_up(hidden + classes, 128))

    lp = params['label_conv']
    wy = lp['W'].astype(jnp.bfloat16)
    asy = _block_diag(lp['att_src'])
    adyT = _block_diag(lp['att_dst']).T
    ap, mp = params['attn'], params['mlp']

    for i in range(num_layers):
        adj = graphs[i]['adj']
        ew = graphs[i]['ew']
        cp = params['convs'][i]
        packed = fused_layer(
            x.astype(jnp.bfloat16), y.astype(jnp.bfloat16), adj, ew,
            cp['W'].astype(jnp.bfloat16), _block_diag(cp['att_src']),
            _block_diag(cp['att_dst']).T, cp['bias'],
            wy, asy, adyT, lp['bias'],
            ap['W1'], ap['b1'], ap['W2'], mp['W'], mp['b'], lp['ae_coef'],
            apply_relu=(i != num_layers - 1), out_pad=out_pad)
        x = packed[:, :hidden]
        y = packed[:, hidden:hidden + classes]
    return x, y


# ----------------------------------------------------------------------------
if __name__ == "__main__":
    in_channels, hidden, classes, num_layers = 8, 32, 4, 2
    N = [16, 12, 8]                          # node counts per sampled hop

    key = jax.random.PRNGKey(0)
    kx, ky, kp, kw0, kw1 = jax.random.split(key, 5)

    x = jax.random.normal(kx, (N[0], in_channels), jnp.float32)
    y = jax.random.uniform(ky, (N[0], classes), jnp.float32)
    params = init_params(kp, in_channels, hidden, classes, num_layers)

    # Deterministic bipartite sampled adjacencies (no pre-existing self loops),
    # densified ONCE on the host (outside the jitted forward).
    graphs = []
    kws = [kw0, kw1]
    for i in range(num_layers):
        n_src, n_dst = N[i], N[i + 1]
        src_l, dst_l = [], []
        for d in range(n_dst):
            for k in range(1, 4):
                src_l.append((d + k) % n_src)
                dst_l.append(d)
        edge_index = np.stack([np.array(src_l, np.int32),
                               np.array(dst_l, np.int32)])
        E = edge_index.shape[1]
        ew_e = np.asarray(jax.random.uniform(kws[i], (E, 1), jnp.float32))
        adj, ew = build_dense_graph(edge_index, ew_e, n_src, n_dst)
        graphs.append(dict(adj=adj, ew=ew))

    x_out, y_out = lflf_gat_forward(x, y, graphs, params)
    jax.block_until_ready((x_out, y_out))

    assert x_out.shape == (N[-1], hidden)
    assert y_out.shape == (N[-1], classes)
    assert bool(jnp.all(jnp.isfinite(x_out))) and bool(jnp.all(jnp.isfinite(y_out)))
    print("KERNEL_OK")
</pallas_src>

<mosaic_0001>
module attributes {stable_mosaic.version = 11 : i64} {
  func.func @fused_layer_kernel(%arg0: memref<16x8xbf16, #tpu.memory_space<vmem>>, %arg1: memref<16x4xbf16, #tpu.memory_space<vmem>>, %arg2: memref<12x16xf32, #tpu.memory_space<vmem>>, %arg3: memref<12x16xf32, #tpu.memory_space<vmem>>, %arg4: memref<8x64xbf16, #tpu.memory_space<vmem>>, %arg5: memref<2x64xf32, #tpu.memory_space<vmem>>, %arg6: memref<64x2xf32, #tpu.memory_space<vmem>>, %arg7: memref<1x32xf32, #tpu.memory_space<vmem>>, %arg8: memref<4x64xbf16, #tpu.memory_space<vmem>>, %arg9: memref<2x64xf32, #tpu.memory_space<vmem>>, %arg10: memref<64x2xf32, #tpu.memory_space<vmem>>, %arg11: memref<1x32xf32, #tpu.memory_space<vmem>>, %arg12: memref<32x16xf32, #tpu.memory_space<vmem>>, %arg13: memref<1x16xf32, #tpu.memory_space<vmem>>, %arg14: memref<1x16xf32, #tpu.memory_space<vmem>>, %arg15: memref<32x4xf32, #tpu.memory_space<vmem>>, %arg16: memref<1x4xf32, #tpu.memory_space<vmem>>, %arg17: memref<2xf32, #tpu.memory_space<smem>>, %arg18: memref<12x128xf32, #tpu.memory_space<vmem>>) attributes {dimension_semantics = [], scalar_prefetch = 0 : i64, scratch_operands = 0 : i64, tpu.core_type = #tpu.core_type<tc>} {
    %c0 = arith.constant 0 : index
    %c0_0 = arith.constant 0 : index
    %0 = vector.load %arg2[%c0, %c0_0] : memref<12x16xf32, #tpu.memory_space<vmem>>, vector<12x16xf32>
    %cst = arith.constant 0.000000e+00 : f32
    %1 = vector.broadcast %cst : f32 to vector<12x16xf32>
    %2 = arith.cmpf ogt, %0, %1 : vector<12x16xf32>
    %c0_1 = arith.constant 0 : index
    %c0_2 = arith.constant 0 : index
    %3 = vector.load %arg3[%c0_1, %c0_2] : memref<12x16xf32, #tpu.memory_space<vmem>>, vector<12x16xf32>
    %c0_3 = arith.constant 0 : index
    %c0_4 = arith.constant 0 : index
    %4 = vector.load %arg0[%c0_3, %c0_4] : memref<16x8xbf16, #tpu.memory_space<vmem>>, vector<16x8xbf16>
    %c0_5 = arith.constant 0 : index
    %c0_6 = arith.constant 0 : index
    %5 = vector.load %arg4[%c0_5, %c0_6] : memref<8x64xbf16, #tpu.memory_space<vmem>>, vector<8x64xbf16>
    %cst_7 = arith.constant dense<0.000000e+00> : vector<16x64xf32>
    %6 = tpu.matmul %4, %5, %cst_7 {dimension_numbers = #tpu.dot_dimension_numbers<[1], [0], [0], [1], [0, 0, 1, 1], [], []>} : vector<16x8xbf16>, vector<8x64xbf16>, vector<16x64xf32> -> vector<16x64xf32>
    %7 = vector.extract_strided_slice %6 {offsets = [0, 0], sizes = [12, 64], strides = [1, 1]} : vector<16x64xf32> to vector<12x64xf32>
    %c0_8 = arith.constant 0 : index
    %c0_9 = arith.constant 0 : index
    %8 = vector.load %arg5[%c0_8, %c0_9] : memref<2x64xf32, #tpu.memory_space<vmem>>, vector<2x64xf32>
    %cst_10 = arith.constant dense<0.000000e+00> : vector<2x16xf32>
    %9 = tpu.matmul %8, %6, %cst_10 {dimension_numbers = #tpu.dot_dimension_numbers<[1], [1], [0], [0], [0, 0, 1, 0], [], []>} : vector<2x64xf32>, vector<16x64xf32>, vector<2x16xf32> -> vector<2x16xf32>
    %c0_11 = arith.constant 0 : index
    %c0_12 = arith.constant 0 : index
    %10 = vector.load %arg6[%c0_11, %c0_12] : memref<64x2xf32, #tpu.memory_space<vmem>>, vector<64x2xf32>
    %cst_13 = arith.constant dense<0.000000e+00> : vector<12x2xf32>
    %11 = tpu.matmul %7, %10, %cst_13 {dimension_numbers = #tpu.dot_dimension_numbers<[1], [0], [0], [1], [0, 0, 1, 1], [], []>} : vector<12x64xf32>, vector<64x2xf32>, vector<12x2xf32> -> vector<12x2xf32>
    %12 = vector.extract_strided_slice %11 {offsets = [0, 0], sizes = [12, 1], strides = [1, 1]} : vector<12x2xf32> to vector<12x1xf32>
    %13 = vector.extract_strided_slice %9 {offsets = [0, 0], sizes = [1, 16], strides = [1, 1]} : vector<2x16xf32> to vector<1x16xf32>
    %14 = vector.broadcast %12 : vector<12x1xf32> to vector<12x16xf32>
    %15 = vector.broadcast %13 : vector<1x16xf32> to vector<12x16xf32>
    %16 = arith.addf %14, %15 : vector<12x16xf32>
    %cst_14 = arith.constant 0.000000e+00 : f32
    %17 = vector.broadcast %cst_14 : f32 to vector<12x16xf32>
    %18 = arith.cmpf oge, %16, %17 : vector<12x16xf32>
    %cst_15 = arith.constant 2.000000e-01 : f32
    %19 = vector.broadcast %cst_15 : f32 to vector<12x16xf32>
    %20 = arith.mulf %19, %16 : vector<12x16xf32>
    %21 = arith.select %18, %16, %20 : vector<12x16xi1>, vector<12x16xf32>
    %cst_16 = arith.constant -1.000000e+30 : f32
    %22 = vector.broadcast %cst_16 : f32 to vector<12x16xf32>
    %23 = arith.select %2, %21, %22 : vector<12x16xi1>, vector<12x16xf32>
    %cst_17 = arith.constant dense<0xFF800000> : vector<12xf32>
    %24 = vector.multi_reduction <maximumf>, %23, %cst_17 [1] : vector<12x16xf32> to vector<12xf32>
    %25 = vector.shape_cast %24 : vector<12xf32> to vector<12x1xf32>
    %26 = vector.broadcast %25 : vector<12x1xf32> to vector<12x16xf32>
    %27 = arith.subf %23, %26 : vector<12x16xf32>
    %28 = math.exp %27 : vector<12x16xf32>
    %cst_18 = arith.constant 0.000000e+00 : f32
    %29 = vector.broadcast %cst_18 : f32 to vector<12x16xf32>
    %30 = arith.select %2, %28, %29 : vector<12x16xi1>, vector<12x16xf32>
    %cst_19 = arith.constant dense<0.000000e+00> : vector<12xf32>
    %31 = vector.multi_reduction <add>, %30, %cst_19 [1] : vector<12x16xf32> to vector<12xf32>
    %32 = vector.shape_cast %31 : vector<12xf32> to vector<12x1xf32>
    %cst_20 = arith.constant 1.000000e-30 : f32
    %33 = vector.broadcast %cst_20 : f32 to vector<12x1xf32>
    %34 = arith.maximumf %32, %33 : vector<12x1xf32>
    %35 = tpu.reciprocal %34 {approx = true} : vector<12x1xf32> -> vector<12x1xf32>
    %36 = vector.broadcast %35 : vector<12x1xf32> to vector<12x16xf32>
    %37 = arith.mulf %30, %36 : vector<12x16xf32>
    %38 = vector.extract_strided_slice %11 {offsets = [0, 1], sizes = [12, 1], strides = [1, 1]} : vector<12x2xf32> to vector<12x1xf32>
    %39 = vector.extract_strided_slice %9 {offsets = [1, 0], sizes = [1, 16], strides = [1, 1]} : vector<2x16xf32> to vector<1x16xf32>
    %40 = vector.broadcast %38 : vector<12x1xf32> to vector<12x16xf32>
    %41 = vector.broadcast %39 : vector<1x16xf32> to vector<12x16xf32>
    %42 = arith.addf %40, %41 : vector<12x16xf32>
    %cst_21 = arith.constant 0.000000e+00 : f32
    %43 = vector.broadcast %cst_21 : f32 to vector<12x16xf32>
    %44 = arith.cmpf oge, %42, %43 : vector<12x16xf32>
    %cst_22 = arith.constant 2.000000e-01 : f32
    %45 = vector.broadcast %cst_22 : f32 to vector<12x16xf32>
    %46 = arith.mulf %45, %42 : vector<12x16xf32>
    %47 = arith.select %44, %42, %46 : vector<12x16xi1>, vector<12x16xf32>
    %cst_23 = arith.constant -1.000000e+30 : f32
    %48 = vector.broadcast %cst_23 : f32 to vector<12x16xf32>
    %49 = arith.select %2, %47, %48 : vector<12x16xi1>, vector<12x16xf32>
    %cst_24 = arith.constant dense<0xFF800000> : vector<12xf32>
    %50 = vector.multi_reduction <maximumf>, %49, %cst_24 [1] : vector<12x16xf32> to vector<12xf32>
    %51 = vector.shape_cast %50 : vector<12xf32> to vector<12x1xf32>
    %52 = vector.broadcast %51 : vector<12x1xf32> to vector<12x16xf32>
    %53 = arith.subf %49, %52 : vector<12x16xf32>
    %54 = math.exp %53 : vector<12x16xf32>
    %cst_25 = arith.constant 0.000000e+00 : f32
    %55 = vector.broadcast %cst_25 : f32 to vector<12x16xf32>
    %56 = arith.select %2, %54, %55 : vector<12x16xi1>, vector<12x16xf32>
    %cst_26 = arith.constant dense<0.000000e+00> : vector<12xf32>
    %57 = vector.multi_reduction <add>, %56, %cst_26 [1] : vector<12x16xf32> to vector<12xf32>
    %58 = vector.shape_cast %57 : vector<12xf32> to vector<12x1xf32>
    %cst_27 = arith.constant 1.000000e-30 : f32
    %59 = vector.broadcast %cst_27 : f32 to vector<12x1xf32>
    %60 = arith.maximumf %58, %59 : vector<12x1xf32>
    %61 = tpu.reciprocal %60 {approx = true} : vector<12x1xf32> -> vector<12x1xf32>
    %62 = vector.broadcast %61 : vector<12x1xf32> to vector<12x16xf32>
    %63 = arith.mulf %56, %62 : vector<12x16xf32>
    %64 = tpu.concatenate %37, %63 in 1 : vector<12x16xf32>, vector<12x16xf32> -> vector<12x32xf32>
    %65 = arith.truncf %64 : vector<12x32xf32> to vector<12x32xbf16>
    %66 = vector.extract_strided_slice %6 {offsets = [0, 0], sizes = [16, 32], strides = [1, 1]} : vector<16x64xf32> to vector<16x32xf32>
    %67 = vector.extract_strided_slice %6 {offsets = [0, 32], sizes = [16, 32], strides = [1, 1]} : vector<16x64xf32> to vector<16x32xf32>
    %68 = tpu.concatenate %66, %67 in 0 : vector<16x32xf32>, vector<16x32xf32> -> vector<32x32xf32>
    %69 = arith.truncf %68 : vector<32x32xf32> to vector<32x32xbf16>
    %cst_28 = arith.constant dense<0.000000e+00> : vector<12x32xf32>
    %70 = tpu.matmul %65, %69, %cst_28 {dimension_numbers = #tpu.dot_dimension_numbers<[1], [0], [0], [1], [0, 0, 1, 1], [], []>} : vector<12x32xbf16>, vector<32x32xbf16>, vector<12x32xf32> -> vector<12x32xf32>
    %cst_29 = arith.constant 5.000000e-01 : f32
    %71 = vector.broadcast %cst_29 : f32 to vector<12x32xf32>
    %72 = arith.mulf %70, %71 : vector<12x32xf32>
    %c0_30 = arith.constant 0 : index
    %c0_31 = arith.constant 0 : index
    %73 = vector.load %arg7[%c0_30, %c0_31] : memref<1x32xf32, #tpu.memory_space<vmem>>, vector<1x32xf32>
    %74 = vector.broadcast %73 : vector<1x32xf32> to vector<12x32xf32>
    %75 = arith.addf %72, %74 : vector<12x32xf32>
    %c0_32 = arith.constant 0 : index
    %c0_33 = arith.constant 0 : index
    %76 = vector.load %arg1[%c0_32, %c0_33] : memref<16x4xbf16, #tpu.memory_space<vmem>>, vector<16x4xbf16>
    %c0_34 = arith.constant 0 : index
    %c0_35 = arith.constant 0 : index
    %77 = vector.load %arg8[%c0_34, %c0_35] : memref<4x64xbf16, #tpu.memory_space<vmem>>, vector<4x64xbf16>
    %cst_36 = arith.constant dense<0.000000e+00> : vector<16x64xf32>
    %78 = tpu.matmul %76, %77, %cst_36 {dimension_numbers = #tpu.dot_dimension_numbers<[1], [0], [0], [1], [0, 0, 1, 1], [], []>} : vector<16x4xbf16>, vector<4x64xbf16>, vector<16x64xf32> -> vector<16x64xf32>
    %79 = vector.extract_strided_slice %78 {offsets = [0, 0], sizes = [12, 64], strides = [1, 1]} : vector<16x64xf32> to vector<12x64xf32>
    %c0_37 = arith.constant 0 : index
    %c0_38 = arith.constant 0 : index
    %80 = vector.load %arg9[%c0_37, %c0_38] : memref<2x64xf32, #tpu.memory_space<vmem>>, vector<2x64xf32>
    %cst_39 = arith.constant dense<0.000000e+00> : vector<2x16xf32>
    %81 = tpu.matmul %80, %78, %cst_39 {dimension_numbers = #tpu.dot_dimension_numbers<[1], [1], [0], [0], [0, 0, 1, 0], [], []>} : vector<2x64xf32>, vector<16x64xf32>, vector<2x16xf32> -> vector<2x16xf32>
    %c0_40 = arith.constant 0 : index
    %c0_41 = arith.constant 0 : index
    %82 = vector.load %arg10[%c0_40, %c0_41] : memref<64x2xf32, #tpu.memory_space<vmem>>, vector<64x2xf32>
    %cst_42 = arith.constant dense<0.000000e+00> : vector<12x2xf32>
    %83 = tpu.matmul %79, %82, %cst_42 {dimension_numbers = #tpu.dot_dimension_numbers<[1], [0], [0], [1], [0, 0, 1, 1], [], []>} : vector<12x64xf32>, vector<64x2xf32>, vector<12x2xf32> -> vector<12x2xf32>
    %84 = vector.extract_strided_slice %83 {offsets = [0, 0], sizes = [12, 1], strides = [1, 1]} : vector<12x2xf32> to vector<12x1xf32>
    %85 = vector.extract_strided_slice %81 {offsets = [0, 0], sizes = [1, 16], strides = [1, 1]} : vector<2x16xf32> to vector<1x16xf32>
    %86 = vector.broadcast %84 : vector<12x1xf32> to vector<12x16xf32>
    %87 = vector.broadcast %85 : vector<1x16xf32> to vector<12x16xf32>
    %88 = arith.addf %86, %87 : vector<12x16xf32>
    %c0_43 = arith.constant 0 : index
    %89 = memref.load %arg17[%c0_43] : memref<2xf32, #tpu.memory_space<smem>>
    %90 = vector.broadcast %89 : f32 to vector<12x16xf32>
    %91 = arith.mulf %3, %90 : vector<12x16xf32>
    %92 = arith.addf %88, %91 : vector<12x16xf32>
    %cst_44 = arith.constant 0.000000e+00 : f32
    %93 = vector.broadcast %cst_44 : f32 to vector<12x16xf32>
    %94 = arith.cmpf oge, %92, %93 : vector<12x16xf32>
    %cst_45 = arith.constant 2.000000e-01 : f32
    %95 = vector.broadcast %cst_45 : f32 to vector<12x16xf32>
    %96 = arith.mulf %95, %92 : vector<12x16xf32>
    %97 = arith.select %94, %92, %96 : vector<12x16xi1>, vector<12x16xf32>
    %cst_46 = arith.constant -1.000000e+30 : f32
    %98 = vector.broadcast %cst_46 : f32 to vector<12x16xf32>
    %99 = arith.select %2, %97, %98 : vector<12x16xi1>, vector<12x16xf32>
    %cst_47 = arith.constant dense<0xFF800000> : vector<12xf32>
    %100 = vector.multi_reduction <maximumf>, %99, %cst_47 [1] : vector<12x16xf32> to vector<12xf32>
    %101 = vector.shape_cast %100 : vector<12xf32> to vector<12x1xf32>
    %102 = vector.broadcast %101 : vector<12x1xf32> to vector<12x16xf32>
    %103 = arith.subf %99, %102 : vector<12x16xf32>
    %104 = math.exp %103 : vector<12x16xf32>
    %cst_48 = arith.constant 0.000000e+00 : f32
    %105 = vector.broadcast %cst_48 : f32 to vector<12x16xf32>
    %106 = arith.select %2, %104, %105 : vector<12x16xi1>, vector<12x16xf32>
    %cst_49 = arith.constant dense<0.000000e+00> : vector<12xf32>
    %107 = vector.multi_reduction <add>, %106, %cst_49 [1] : vector<12x16xf32> to vector<12xf32>
    %108 = vector.shape_cast %107 : vector<12xf32> to vector<12x1xf32>
    %cst_50 = arith.constant 1.000000e-30 : f32
    %109 = vector.broadcast %cst_50 : f32 to vector<12x1xf32>
    %110 = arith.maximumf %108, %109 : vector<12x1xf32>
    %111 = tpu.reciprocal %110 {approx = true} : vector<12x1xf32> -> vector<12x1xf32>
    %112 = vector.broadcast %111 : vector<12x1xf32> to vector<12x16xf32>
    %113 = arith.mulf %106, %112 : vector<12x16xf32>
    %114 = vector.extract_strided_slice %83 {offsets = [0, 1], sizes = [12, 1], strides = [1, 1]} : vector<12x2xf32> to vector<12x1xf32>
    %115 = vector.extract_strided_slice %81 {offsets = [1, 0], sizes = [1, 16], strides = [1, 1]} : vector<2x16xf32> to vector<1x16xf32>
    %116 = vector.broadcast %114 : vector<12x1xf32> to vector<12x16xf32>
    %117 = vector.broadcast %115 : vector<1x16xf32> to vector<12x16xf32>
    %118 = arith.addf %116, %117 : vector<12x16xf32>
    %c1 = arith.constant 1 : index
    %119 = memref.load %arg17[%c1] : memref<2xf32, #tpu.memory_space<smem>>
    %120 = vector.broadcast %119 : f32 to vector<12x16xf32>
    %121 = arith.mulf %3, %120 : vector<12x16xf32>
    %122 = arith.addf %118, %121 : vector<12x16xf32>
    %cst_51 = arith.constant 0.000000e+00 : f32
    %123 = vector.broadcast %cst_51 : f32 to vector<12x16xf32>
    %124 = arith.cmpf oge, %122, %123 : vector<12x16xf32>
    %cst_52 = arith.constant 2.000000e-01 : f32
    %125 = vector.broadcast %cst_52 : f32 to vector<12x16xf32>
    %126 = arith.mulf %125, %122 : vector<12x16xf32>
    %127 = arith.select %124, %122, %126 : vector<12x16xi1>, vector<12x16xf32>
    %cst_53 = arith.constant -1.000000e+30 : f32
    %128 = vector.broadcast %cst_53 : f32 to vector<12x16xf32>
    %129 = arith.select %2, %127, %128 : vector<12x16xi1>, vector<12x16xf32>
    %cst_54 = arith.constant dense<0xFF800000> : vector<12xf32>
    %130 = vector.multi_reduction <maximumf>, %129, %cst_54 [1] : vector<12x16xf32> to vector<12xf32>
    %131 = vector.shape_cast %130 : vector<12xf32> to vector<12x1xf32>
    %132 = vector.broadcast %131 : vector<12x1xf32> to vector<12x16xf32>
    %133 = arith.subf %129, %132 : vector<12x16xf32>
    %134 = math.exp %133 : vector<12x16xf32>
    %cst_55 = arith.constant 0.000000e+00 : f32
    %135 = vector.broadcast %cst_55 : f32 to vector<12x16xf32>
    %136 = arith.select %2, %134, %135 : vector<12x16xi1>, vector<12x16xf32>
    %cst_56 = arith.constant dense<0.000000e+00> : vector<12xf32>
    %137 = vector.multi_reduction <add>, %136, %cst_56 [1] : vector<12x16xf32> to vector<12xf32>
    %138 = vector.shape_cast %137 : vector<12xf32> to vector<12x1xf32>
    %cst_57 = arith.constant 1.000000e-30 : f32
    %139 = vector.broadcast %cst_57 : f32 to vector<12x1xf32>
    %140 = arith.maximumf %138, %139 : vector<12x1xf32>
    %141 = tpu.reciprocal %140 {approx = true} : vector<12x1xf32> -> vector<12x1xf32>
    %142 = vector.broadcast %141 : vector<12x1xf32> to vector<12x16xf32>
    %143 = arith.mulf %136, %142 : vector<12x16xf32>
    %144 = tpu.concatenate %113, %143 in 1 : vector<12x16xf32>, vector<12x16xf32> -> vector<12x32xf32>
    %145 = arith.truncf %144 : vector<12x32xf32> to vector<12x32xbf16>
    %146 = vector.extract_strided_slice %78 {offsets = [0, 0], sizes = [16, 32], strides = [1, 1]} : vector<16x64xf32> to vector<16x32xf32>
    %147 = vector.extract_strided_slice %78 {offsets = [0, 32], sizes = [16, 32], strides = [1, 1]} : vector<16x64xf32> to vector<16x32xf32>
    %148 = tpu.concatenate %146, %147 in 0 : vector<16x32xf32>, vector<16x32xf32> -> vector<32x32xf32>
    %149 = arith.truncf %148 : vector<32x32xf32> to vector<32x32xbf16>
    %cst_58 = arith.constant dense<0.000000e+00> : vector<12x32xf32>
    %150 = tpu.matmul %145, %149, %cst_58 {dimension_numbers = #tpu.dot_dimension_numbers<[1], [0], [0], [1], [0, 0, 1, 1], [], []>} : vector<12x32xbf16>, vector<32x32xbf16>, vector<12x32xf32> -> vector<12x32xf32>
    %cst_59 = arith.constant 5.000000e-01 : f32
    %151 = vector.broadcast %cst_59 : f32 to vector<12x32xf32>
    %152 = arith.mulf %150, %151 : vector<12x32xf32>
    %c0_60 = arith.constant 0 : index
    %c0_61 = arith.constant 0 : index
    %153 = vector.load %arg11[%c0_60, %c0_61] : memref<1x32xf32, #tpu.memory_space<vmem>>, vector<1x32xf32>
    %154 = vector.broadcast %153 : vector<1x32xf32> to vector<12x32xf32>
    %155 = arith.addf %152, %154 : vector<12x32xf32>
    %156 = tpu.concatenate %75, %155 in 0 : vector<12x32xf32>, vector<12x32xf32> -> vector<24x32xf32>
    %c0_62 = arith.constant 0 : index
    %c0_63 = arith.constant 0 : index
    %157 = vector.load %arg12[%c0_62, %c0_63] : memref<32x16xf32, #tpu.memory_space<vmem>>, vector<32x16xf32>
    %cst_64 = arith.constant dense<0.000000e+00> : vector<24x16xf32>
    %158 = tpu.matmul %156, %157, %cst_64 {dimension_numbers = #tpu.dot_dimension_numbers<[1], [0], [0], [1], [0, 0, 1, 1], [], []>} : vector<24x32xf32>, vector<32x16xf32>, vector<24x16xf32> -> vector<24x16xf32>
    %c0_65 = arith.constant 0 : index
    %c0_66 = arith.constant 0 : index
    %159 = vector.load %arg13[%c0_65, %c0_66] : memref<1x16xf32, #tpu.memory_space<vmem>>, vector<1x16xf32>
    %160 = vector.broadcast %159 : vector<1x16xf32> to vector<24x16xf32>
    %161 = arith.addf %158, %160 : vector<24x16xf32>
    %162 = math.tanh %161 : vector<24x16xf32>
    %c0_67 = arith.constant 0 : index
    %c0_68 = arith.constant 0 : index
    %163 = vector.load %arg14[%c0_67, %c0_68] : memref<1x16xf32, #tpu.memory_space<vmem>>, vector<1x16xf32>
    %164 = vector.broadcast %163 : vector<1x16xf32> to vector<24x16xf32>
    %165 = arith.mulf %162, %164 : vector<24x16xf32>
    %cst_69 = arith.constant dense<0.000000e+00> : vector<24xf32>
    %166 = vector.multi_reduction <add>, %165, %cst_69 [1] : vector<24x16xf32> to vector<24xf32>
    %167 = vector.shape_cast %166 : vector<24xf32> to vector<24x1xf32>
    %168 = vector.extract_strided_slice %167 {offsets = [0, 0], sizes = [12, 1], strides = [1, 1]} : vector<24x1xf32> to vector<12x1xf32>
    %169 = vector.extract_strided_slice %167 {offsets = [12, 0], sizes = [12, 1], strides = [1, 1]} : vector<24x1xf32> to vector<12x1xf32>
    %170 = arith.maximumf %168, %169 : vector<12x1xf32>
    %171 = arith.subf %168, %170 : vector<12x1xf32>
    %172 = math.exp %171 : vector<12x1xf32>
    %173 = arith.subf %169, %170 : vector<12x1xf32>
    %174 = math.exp %173 : vector<12x1xf32>
    %175 = arith.addf %172, %174 : vector<12x1xf32>
    %176 = tpu.reciprocal %175 {approx = true} : vector<12x1xf32> -> vector<12x1xf32>
    %177 = vector.broadcast %172 : vector<12x1xf32> to vector<12x32xf32>
    %178 = arith.mulf %177, %75 : vector<12x32xf32>
    %179 = vector.broadcast %174 : vector<12x1xf32> to vector<12x32xf32>
    %180 = arith.mulf %179, %155 : vector<12x32xf32>
    %181 = arith.addf %178, %180 : vector<12x32xf32>
    %182 = vector.broadcast %176 : vector<12x1xf32> to vector<12x32xf32>
    %183 = arith.mulf %181, %182 : vector<12x32xf32>
    %cst_70 = arith.constant 0.000000e+00 : f32
    %184 = vector.broadcast %cst_70 : f32 to vector<12x32xf32>
    %185 = arith.maximumf %183, %184 : vector<12x32xf32>
    %c0_71 = arith.constant 0 : index
    %c0_72 = arith.constant 0 : index
    %186 = vector.load %arg15[%c0_71, %c0_72] : memref<32x4xf32, #tpu.memory_space<vmem>>, vector<32x4xf32>
    %cst_73 = arith.constant dense<0.000000e+00> : vector<12x4xf32>
    %187 = tpu.matmul %185, %186, %cst_73 {dimension_numbers = #tpu.dot_dimension_numbers<[1], [0], [0], [1], [0, 0, 1, 1], [], []>} : vector<12x32xf32>, vector<32x4xf32>, vector<12x4xf32> -> vector<12x4xf32>
    %c0_74 = arith.constant 0 : index
    %c0_75 = arith.constant 0 : index
    %188 = vector.load %arg16[%c0_74, %c0_75] : memref<1x4xf32, #tpu.memory_space<vmem>>, vector<1x4xf32>
    %189 = vector.broadcast %188 : vector<1x4xf32> to vector<12x4xf32>
    %190 = arith.addf %187, %189 : vector<12x4xf32>
    %191 = math.absf %190 : vector<12x4xf32>
    %cst_76 = arith.constant 0.000000e+00 : f32
    %192 = vector.broadcast %cst_76 : f32 to vector<12x4xf32>
    %193 = arith.subf %192, %191 : vector<12x4xf32>
    %194 = math.exp %193 : vector<12x4xf32>
    %cst_77 = arith.constant 0.000000e+00 : f32
    %195 = vector.broadcast %cst_77 : f32 to vector<12x4xf32>
    %196 = arith.cmpf oge, %190, %195 : vector<12x4xf32>
    %cst_78 = arith.constant 1.000000e+00 : f32
    %197 = vector.broadcast %cst_78 : f32 to vector<12x4xf32>
    %198 = arith.select %196, %197, %194 : vector<12x4xi1>, vector<12x4xf32>
    %cst_79 = arith.constant 1.000000e+00 : f32
    %199 = vector.broadcast %cst_79 : f32 to vector<12x4xf32>
    %200 = arith.addf %199, %194 : vector<12x4xf32>
    %201 = tpu.reciprocal %200 {approx = true} : vector<12x4xf32> -> vector<12x4xf32>
    %202 = arith.mulf %198, %201 : vector<12x4xf32>
    %cst_80 = arith.constant 0.000000e+00 : f32
    %203 = vector.broadcast %cst_80 : f32 to vector<12x92xf32>
    %204 = tpu.concatenate %185, %202, %203 in 1 : vector<12x32xf32>, vector<12x4xf32>, vector<12x92xf32> -> vector<12x128xf32>
    %c0_81 = arith.constant 0 : index
    %c0_82 = arith.constant 0 : index
    %205 = vector.load %arg18[%c0_81, %c0_82] : memref<12x128xf32, #tpu.memory_space<vmem>>, vector<12x128xf32>
    tpu.vector_store %arg18[%c0_81, %c0_82], %204 {strides = array<i32>} : memref<12x128xf32, #tpu.memory_space<vmem>>, vector<12x128xf32>,
    return
  }
}

module attributes {stable_mosaic.version = 11 : i64} {
  func.func @fused_layer_kernel(%arg0: memref<12x32xbf16, #tpu.memory_space<vmem>>, %arg1: memref<12x4xbf16, #tpu.memory_space<vmem>>, %arg2: memref<8x12xf32, #tpu.memory_space<vmem>>, %arg3: memref<8x12xf32, #tpu.memory_space<vmem>>, %arg4: memref<32x64xbf16, #tpu.memory_space<vmem>>, %arg5: memref<2x64xf32, #tpu.memory_space<vmem>>, %arg6: memref<64x2xf32, #tpu.memory_space<vmem>>, %arg7: memref<1x32xf32, #tpu.memory_space<vmem>>, %arg8: memref<4x64xbf16, #tpu.memory_space<vmem>>, %arg9: memref<2x64xf32, #tpu.memory_space<vmem>>, %arg10: memref<64x2xf32, #tpu.memory_space<vmem>>, %arg11: memref<1x32xf32, #tpu.memory_space<vmem>>, %arg12: memref<32x16xf32, #tpu.memory_space<vmem>>, %arg13: memref<1x16xf32, #tpu.memory_space<vmem>>, %arg14: memref<1x16xf32, #tpu.memory_space<vmem>>, %arg15: memref<32x4xf32, #tpu.memory_space<vmem>>, %arg16: memref<1x4xf32, #tpu.memory_space<vmem>>, %arg17: memref<2xf32, #tpu.memory_space<smem>>, %arg18: memref<8x128xf32, #tpu.memory_space<vmem>>) attributes {dimension_semantics = [], scalar_prefetch = 0 : i64, scratch_operands = 0 : i64, tpu.core_type = #tpu.core_type<tc>} {
    %c0 = arith.constant 0 : index
    %c0_0 = arith.constant 0 : index
    %0 = vector.load %arg2[%c0, %c0_0] : memref<8x12xf32, #tpu.memory_space<vmem>>, vector<8x12xf32>
    %cst = arith.constant 0.000000e+00 : f32
    %1 = vector.broadcast %cst : f32 to vector<8x12xf32>
    %2 = arith.cmpf ogt, %0, %1 : vector<8x12xf32>
    %c0_1 = arith.constant 0 : index
    %c0_2 = arith.constant 0 : index
    %3 = vector.load %arg3[%c0_1, %c0_2] : memref<8x12xf32, #tpu.memory_space<vmem>>, vector<8x12xf32>
    %c0_3 = arith.constant 0 : index
    %c0_4 = arith.constant 0 : index
    %4 = vector.load %arg0[%c0_3, %c0_4] : memref<12x32xbf16, #tpu.memory_space<vmem>>, vector<12x32xbf16>
    %c0_5 = arith.constant 0 : index
    %c0_6 = arith.constant 0 : index
    %5 = vector.load %arg4[%c0_5, %c0_6] : memref<32x64xbf16, #tpu.memory_space<vmem>>, vector<32x64xbf16>
    %cst_7 = arith.constant dense<0.000000e+00> : vector<12x64xf32>
    %6 = tpu.matmul %4, %5, %cst_7 {dimension_numbers = #tpu.dot_dimension_numbers<[1], [0], [0], [1], [0, 0, 1, 1], [], []>} : vector<12x32xbf16>, vector<32x64xbf16>, vector<12x64xf32> -> vector<12x64xf32>
    %7 = vector.extract_strided_slice %6 {offsets = [0, 0], sizes = [8, 64], strides = [1, 1]} : vector<12x64xf32> to vector<8x64xf32>
    %c0_8 = arith.constant 0 : index
    %c0_9 = arith.constant 0 : index
    %8 = vector.load %arg5[%c0_8, %c0_9] : memref<2x64xf32, #tpu.memory_space<vmem>>, vector<2x64xf32>
    %cst_10 = arith.constant dense<0.000000e+00> : vector<2x12xf32>
    %9 = tpu.matmul %8, %6, %cst_10 {dimension_numbers = #tpu.dot_dimension_numbers<[1], [1], [0], [0], [0, 0, 1, 0], [], []>} : vector<2x64xf32>, vector<12x64xf32>, vector<2x12xf32> -> vector<2x12xf32>
    %c0_11 = arith.constant 0 : index
    %c0_12 = arith.constant 0 : index
    %10 = vector.load %arg6[%c0_11, %c0_12] : memref<64x2xf32, #tpu.memory_space<vmem>>, vector<64x2xf32>
    %cst_13 = arith.constant dense<0.000000e+00> : vector<8x2xf32>
    %11 = tpu.matmul %7, %10, %cst_13 {dimension_numbers = #tpu.dot_dimension_numbers<[1], [0], [0], [1], [0, 0, 1, 1], [], []>} : vector<8x64xf32>, vector<64x2xf32>, vector<8x2xf32> -> vector<8x2xf32>
    %12 = vector.extract_strided_slice %11 {offsets = [0, 0], sizes = [8, 1], strides = [1, 1]} : vector<8x2xf32> to vector<8x1xf32>
    %13 = vector.extract_strided_slice %9 {offsets = [0, 0], sizes = [1, 12], strides = [1, 1]} : vector<2x12xf32> to vector<1x12xf32>
    %14 = vector.broadcast %12 : vector<8x1xf32> to vector<8x12xf32>
    %15 = vector.broadcast %13 : vector<1x12xf32> to vector<8x12xf32>
    %16 = arith.addf %14, %15 : vector<8x12xf32>
    %cst_14 = arith.constant 0.000000e+00 : f32
    %17 = vector.broadcast %cst_14 : f32 to vector<8x12xf32>
    %18 = arith.cmpf oge, %16, %17 : vector<8x12xf32>
    %cst_15 = arith.constant 2.000000e-01 : f32
    %19 = vector.broadcast %cst_15 : f32 to vector<8x12xf32>
    %20 = arith.mulf %19, %16 : vector<8x12xf32>
    %21 = arith.select %18, %16, %20 : vector<8x12xi1>, vector<8x12xf32>
    %cst_16 = arith.constant -1.000000e+30 : f32
    %22 = vector.broadcast %cst_16 : f32 to vector<8x12xf32>
    %23 = arith.select %2, %21, %22 : vector<8x12xi1>, vector<8x12xf32>
    %cst_17 = arith.constant dense<0xFF800000> : vector<8xf32>
    %24 = vector.multi_reduction <maximumf>, %23, %cst_17 [1] : vector<8x12xf32> to vector<8xf32>
    %25 = vector.shape_cast %24 : vector<8xf32> to vector<8x1xf32>
    %26 = vector.broadcast %25 : vector<8x1xf32> to vector<8x12xf32>
    %27 = arith.subf %23, %26 : vector<8x12xf32>
    %28 = math.exp %27 : vector<8x12xf32>
    %cst_18 = arith.constant 0.000000e+00 : f32
    %29 = vector.broadcast %cst_18 : f32 to vector<8x12xf32>
    %30 = arith.select %2, %28, %29 : vector<8x12xi1>, vector<8x12xf32>
    %cst_19 = arith.constant dense<0.000000e+00> : vector<8xf32>
    %31 = vector.multi_reduction <add>, %30, %cst_19 [1] : vector<8x12xf32> to vector<8xf32>
    %32 = vector.shape_cast %31 : vector<8xf32> to vector<8x1xf32>
    %cst_20 = arith.constant 1.000000e-30 : f32
    %33 = vector.broadcast %cst_20 : f32 to vector<8x1xf32>
    %34 = arith.maximumf %32, %33 : vector<8x1xf32>
    %35 = tpu.reciprocal %34 {approx = true} : vector<8x1xf32> -> vector<8x1xf32>
    %36 = vector.broadcast %35 : vector<8x1xf32> to vector<8x12xf32>
    %37 = arith.mulf %30, %36 : vector<8x12xf32>
    %38 = vector.extract_strided_slice %11 {offsets = [0, 1], sizes = [8, 1], strides = [1, 1]} : vector<8x2xf32> to vector<8x1xf32>
    %39 = vector.extract_strided_slice %9 {offsets = [1, 0], sizes = [1, 12], strides = [1, 1]} : vector<2x12xf32> to vector<1x12xf32>
    %40 = vector.broadcast %38 : vector<8x1xf32> to vector<8x12xf32>
    %41 = vector.broadcast %39 : vector<1x12xf32> to vector<8x12xf32>
    %42 = arith.addf %40, %41 : vector<8x12xf32>
    %cst_21 = arith.constant 0.000000e+00 : f32
    %43 = vector.broadcast %cst_21 : f32 to vector<8x12xf32>
    %44 = arith.cmpf oge, %42, %43 : vector<8x12xf32>
    %cst_22 = arith.constant 2.000000e-01 : f32
    %45 = vector.broadcast %cst_22 : f32 to vector<8x12xf32>
    %46 = arith.mulf %45, %42 : vector<8x12xf32>
    %47 = arith.select %44, %42, %46 : vector<8x12xi1>, vector<8x12xf32>
    %cst_23 = arith.constant -1.000000e+30 : f32
    %48 = vector.broadcast %cst_23 : f32 to vector<8x12xf32>
    %49 = arith.select %2, %47, %48 : vector<8x12xi1>, vector<8x12xf32>
    %cst_24 = arith.constant dense<0xFF800000> : vector<8xf32>
    %50 = vector.multi_reduction <maximumf>, %49, %cst_24 [1] : vector<8x12xf32> to vector<8xf32>
    %51 = vector.shape_cast %50 : vector<8xf32> to vector<8x1xf32>
    %52 = vector.broadcast %51 : vector<8x1xf32> to vector<8x12xf32>
    %53 = arith.subf %49, %52 : vector<8x12xf32>
    %54 = math.exp %53 : vector<8x12xf32>
    %cst_25 = arith.constant 0.000000e+00 : f32
    %55 = vector.broadcast %cst_25 : f32 to vector<8x12xf32>
    %56 = arith.select %2, %54, %55 : vector<8x12xi1>, vector<8x12xf32>
    %cst_26 = arith.constant dense<0.000000e+00> : vector<8xf32>
    %57 = vector.multi_reduction <add>, %56, %cst_26 [1] : vector<8x12xf32> to vector<8xf32>
    %58 = vector.shape_cast %57 : vector<8xf32> to vector<8x1xf32>
    %cst_27 = arith.constant 1.000000e-30 : f32
    %59 = vector.broadcast %cst_27 : f32 to vector<8x1xf32>
    %60 = arith.maximumf %58, %59 : vector<8x1xf32>
    %61 = tpu.reciprocal %60 {approx = true} : vector<8x1xf32> -> vector<8x1xf32>
    %62 = vector.broadcast %61 : vector<8x1xf32> to vector<8x12xf32>
    %63 = arith.mulf %56, %62 : vector<8x12xf32>
    %64 = tpu.concatenate %37, %63 in 1 : vector<8x12xf32>, vector<8x12xf32> -> vector<8x24xf32>
    %65 = arith.truncf %64 : vector<8x24xf32> to vector<8x24xbf16>
    %66 = vector.extract_strided_slice %6 {offsets = [0, 0], sizes = [12, 32], strides = [1, 1]} : vector<12x64xf32> to vector<12x32xf32>
    %67 = vector.extract_strided_slice %6 {offsets = [0, 32], sizes = [12, 32], strides = [1, 1]} : vector<12x64xf32> to vector<12x32xf32>
    %68 = tpu.concatenate %66, %67 in 0 : vector<12x32xf32>, vector<12x32xf32> -> vector<24x32xf32>
    %69 = arith.truncf %68 : vector<24x32xf32> to vector<24x32xbf16>
    %cst_28 = arith.constant dense<0.000000e+00> : vector<8x32xf32>
    %70 = tpu.matmul %65, %69, %cst_28 {dimension_numbers = #tpu.dot_dimension_numbers<[1], [0], [0], [1], [0, 0, 1, 1], [], []>} : vector<8x24xbf16>, vector<24x32xbf16>, vector<8x32xf32> -> vector<8x32xf32>
    %cst_29 = arith.constant 5.000000e-01 : f32
    %71 = vector.broadcast %cst_29 : f32 to vector<8x32xf32>
    %72 = arith.mulf %70, %71 : vector<8x32xf32>
    %c0_30 = arith.constant 0 : index
    %c0_31 = arith.constant 0 : index
    %73 = vector.load %arg7[%c0_30, %c0_31] : memref<1x32xf32, #tpu.memory_space<vmem>>, vector<1x32xf32>
    %74 = vector.broadcast %73 : vector<1x32xf32> to vector<8x32xf32>
    %75 = arith.addf %72, %74 : vector<8x32xf32>
    %c0_32 = arith.constant 0 : index
    %c0_33 = arith.constant 0 : index
    %76 = vector.load %arg1[%c0_32, %c0_33] : memref<12x4xbf16, #tpu.memory_space<vmem>>, vector<12x4xbf16>
    %c0_34 = arith.constant 0 : index
    %c0_35 = arith.constant 0 : index
    %77 = vector.load %arg8[%c0_34, %c0_35] : memref<4x64xbf16, #tpu.memory_space<vmem>>, vector<4x64xbf16>
    %cst_36 = arith.constant dense<0.000000e+00> : vector<12x64xf32>
    %78 = tpu.matmul %76, %77, %cst_36 {dimension_numbers = #tpu.dot_dimension_numbers<[1], [0], [0], [1], [0, 0, 1, 1], [], []>} : vector<12x4xbf16>, vector<4x64xbf16>, vector<12x64xf32> -> vector<12x64xf32>
    %79 = vector.extract_strided_slice %78 {offsets = [0, 0], sizes = [8, 64], strides = [1, 1]} : vector<12x64xf32> to vector<8x64xf32>
    %c0_37 = arith.constant 0 : index
    %c0_38 = arith.constant 0 : index
    %80 = vector.load %arg9[%c0_37, %c0_38] : memref<2x64xf32, #tpu.memory_space<vmem>>, vector<2x64xf32>
    %cst_39 = arith.constant dense<0.000000e+00> : vector<2x12xf32>
    %81 = tpu.matmul %80, %78, %cst_39 {dimension_numbers = #tpu.dot_dimension_numbers<[1], [1], [0], [0], [0, 0, 1, 0], [], []>} : vector<2x64xf32>, vector<12x64xf32>, vector<2x12xf32> -> vector<2x12xf32>
    %c0_40 = arith.constant 0 : index
    %c0_41 = arith.constant 0 : index
    %82 = vector.load %arg10[%c0_40, %c0_41] : memref<64x2xf32, #tpu.memory_space<vmem>>, vector<64x2xf32>
    %cst_42 = arith.constant dense<0.000000e+00> : vector<8x2xf32>
    %83 = tpu.matmul %79, %82, %cst_42 {dimension_numbers = #tpu.dot_dimension_numbers<[1], [0], [0], [1], [0, 0, 1, 1], [], []>} : vector<8x64xf32>, vector<64x2xf32>, vector<8x2xf32> -> vector<8x2xf32>
    %84 = vector.extract_strided_slice %83 {offsets = [0, 0], sizes = [8, 1], strides = [1, 1]} : vector<8x2xf32> to vector<8x1xf32>
    %85 = vector.extract_strided_slice %81 {offsets = [0, 0], sizes = [1, 12], strides = [1, 1]} : vector<2x12xf32> to vector<1x12xf32>
    %86 = vector.broadcast %84 : vector<8x1xf32> to vector<8x12xf32>
    %87 = vector.broadcast %85 : vector<1x12xf32> to vector<8x12xf32>
    %88 = arith.addf %86, %87 : vector<8x12xf32>
    %c0_43 = arith.constant 0 : index
    %89 = memref.load %arg17[%c0_43] : memref<2xf32, #tpu.memory_space<smem>>
    %90 = vector.broadcast %89 : f32 to vector<8x12xf32>
    %91 = arith.mulf %3, %90 : vector<8x12xf32>
    %92 = arith.addf %88, %91 : vector<8x12xf32>
    %cst_44 = arith.constant 0.000000e+00 : f32
    %93 = vector.broadcast %cst_44 : f32 to vector<8x12xf32>
    %94 = arith.cmpf oge, %92, %93 : vector<8x12xf32>
    %cst_45 = arith.constant 2.000000e-01 : f32
    %95 = vector.broadcast %cst_45 : f32 to vector<8x12xf32>
    %96 = arith.mulf %95, %92 : vector<8x12xf32>
    %97 = arith.select %94, %92, %96 : vector<8x12xi1>, vector<8x12xf32>
    %cst_46 = arith.constant -1.000000e+30 : f32
    %98 = vector.broadcast %cst_46 : f32 to vector<8x12xf32>
    %99 = arith.select %2, %97, %98 : vector<8x12xi1>, vector<8x12xf32>
    %cst_47 = arith.constant dense<0xFF800000> : vector<8xf32>
    %100 = vector.multi_reduction <maximumf>, %99, %cst_47 [1] : vector<8x12xf32> to vector<8xf32>
    %101 = vector.shape_cast %100 : vector<8xf32> to vector<8x1xf32>
    %102 = vector.broadcast %101 : vector<8x1xf32> to vector<8x12xf32>
    %103 = arith.subf %99, %102 : vector<8x12xf32>
    %104 = math.exp %103 : vector<8x12xf32>
    %cst_48 = arith.constant 0.000000e+00 : f32
    %105 = vector.broadcast %cst_48 : f32 to vector<8x12xf32>
    %106 = arith.select %2, %104, %105 : vector<8x12xi1>, vector<8x12xf32>
    %cst_49 = arith.constant dense<0.000000e+00> : vector<8xf32>
    %107 = vector.multi_reduction <add>, %106, %cst_49 [1] : vector<8x12xf32> to vector<8xf32>
    %108 = vector.shape_cast %107 : vector<8xf32> to vector<8x1xf32>
    %cst_50 = arith.constant 1.000000e-30 : f32
    %109 = vector.broadcast %cst_50 : f32 to vector<8x1xf32>
    %110 = arith.maximumf %108, %109 : vector<8x1xf32>
    %111 = tpu.reciprocal %110 {approx = true} : vector<8x1xf32> -> vector<8x1xf32>
    %112 = vector.broadcast %111 : vector<8x1xf32> to vector<8x12xf32>
    %113 = arith.mulf %106, %112 : vector<8x12xf32>
    %114 = vector.extract_strided_slice %83 {offsets = [0, 1], sizes = [8, 1], strides = [1, 1]} : vector<8x2xf32> to vector<8x1xf32>
    %115 = vector.extract_strided_slice %81 {offsets = [1, 0], sizes = [1, 12], strides = [1, 1]} : vector<2x12xf32> to vector<1x12xf32>
    %116 = vector.broadcast %114 : vector<8x1xf32> to vector<8x12xf32>
    %117 = vector.broadcast %115 : vector<1x12xf32> to vector<8x12xf32>
    %118 = arith.addf %116, %117 : vector<8x12xf32>
    %c1 = arith.constant 1 : index
    %119 = memref.load %arg17[%c1] : memref<2xf32, #tpu.memory_space<smem>>
    %120 = vector.broadcast %119 : f32 to vector<8x12xf32>
    %121 = arith.mulf %3, %120 : vector<8x12xf32>
    %122 = arith.addf %118, %121 : vector<8x12xf32>
    %cst_51 = arith.constant 0.000000e+00 : f32
    %123 = vector.broadcast %cst_51 : f32 to vector<8x12xf32>
    %124 = arith.cmpf oge, %122, %123 : vector<8x12xf32>
    %cst_52 = arith.constant 2.000000e-01 : f32
    %125 = vector.broadcast %cst_52 : f32 to vector<8x12xf32>
    %126 = arith.mulf %125, %122 : vector<8x12xf32>
    %127 = arith.select %124, %122, %126 : vector<8x12xi1>, vector<8x12xf32>
    %cst_53 = arith.constant -1.000000e+30 : f32
    %128 = vector.broadcast %cst_53 : f32 to vector<8x12xf32>
    %129 = arith.select %2, %127, %128 : vector<8x12xi1>, vector<8x12xf32>
    %cst_54 = arith.constant dense<0xFF800000> : vector<8xf32>
    %130 = vector.multi_reduction <maximumf>, %129, %cst_54 [1] : vector<8x12xf32> to vector<8xf32>
    %131 = vector.shape_cast %130 : vector<8xf32> to vector<8x1xf32>
    %132 = vector.broadcast %131 : vector<8x1xf32> to vector<8x12xf32>
    %133 = arith.subf %129, %132 : vector<8x12xf32>
    %134 = math.exp %133 : vector<8x12xf32>
    %cst_55 = arith.constant 0.000000e+00 : f32
    %135 = vector.broadcast %cst_55 : f32 to vector<8x12xf32>
    %136 = arith.select %2, %134, %135 : vector<8x12xi1>, vector<8x12xf32>
    %cst_56 = arith.constant dense<0.000000e+00> : vector<8xf32>
    %137 = vector.multi_reduction <add>, %136, %cst_56 [1] : vector<8x12xf32> to vector<8xf32>
    %138 = vector.shape_cast %137 : vector<8xf32> to vector<8x1xf32>
    %cst_57 = arith.constant 1.000000e-30 : f32
    %139 = vector.broadcast %cst_57 : f32 to vector<8x1xf32>
    %140 = arith.maximumf %138, %139 : vector<8x1xf32>
    %141 = tpu.reciprocal %140 {approx = true} : vector<8x1xf32> -> vector<8x1xf32>
    %142 = vector.broadcast %141 : vector<8x1xf32> to vector<8x12xf32>
    %143 = arith.mulf %136, %142 : vector<8x12xf32>
    %144 = tpu.concatenate %113, %143 in 1 : vector<8x12xf32>, vector<8x12xf32> -> vector<8x24xf32>
    %145 = arith.truncf %144 : vector<8x24xf32> to vector<8x24xbf16>
    %146 = vector.extract_strided_slice %78 {offsets = [0, 0], sizes = [12, 32], strides = [1, 1]} : vector<12x64xf32> to vector<12x32xf32>
    %147 = vector.extract_strided_slice %78 {offsets = [0, 32], sizes = [12, 32], strides = [1, 1]} : vector<12x64xf32> to vector<12x32xf32>
    %148 = tpu.concatenate %146, %147 in 0 : vector<12x32xf32>, vector<12x32xf32> -> vector<24x32xf32>
    %149 = arith.truncf %148 : vector<24x32xf32> to vector<24x32xbf16>
    %cst_58 = arith.constant dense<0.000000e+00> : vector<8x32xf32>
    %150 = tpu.matmul %145, %149, %cst_58 {dimension_numbers = #tpu.dot_dimension_numbers<[1], [0], [0], [1], [0, 0, 1, 1], [], []>} : vector<8x24xbf16>, vector<24x32xbf16>, vector<8x32xf32> -> vector<8x32xf32>
    %cst_59 = arith.constant 5.000000e-01 : f32
    %151 = vector.broadcast %cst_59 : f32 to vector<8x32xf32>
    %152 = arith.mulf %150, %151 : vector<8x32xf32>
    %c0_60 = arith.constant 0 : index
    %c0_61 = arith.constant 0 : index
    %153 = vector.load %arg11[%c0_60, %c0_61] : memref<1x32xf32, #tpu.memory_space<vmem>>, vector<1x32xf32>
    %154 = vector.broadcast %153 : vector<1x32xf32> to vector<8x32xf32>
    %155 = arith.addf %152, %154 : vector<8x32xf32>
    %156 = tpu.concatenate %75, %155 in 0 : vector<8x32xf32>, vector<8x32xf32> -> vector<16x32xf32>
    %c0_62 = arith.constant 0 : index
    %c0_63 = arith.constant 0 : index
    %157 = vector.load %arg12[%c0_62, %c0_63] : memref<32x16xf32, #tpu.memory_space<vmem>>, vector<32x16xf32>
    %cst_64 = arith.constant dense<0.000000e+00> : vector<16x16xf32>
    %158 = tpu.matmul %156, %157, %cst_64 {dimension_numbers = #tpu.dot_dimension_numbers<[1], [0], [0], [1], [0, 0, 1, 1], [], []>} : vector<16x32xf32>, vector<32x16xf32>, vector<16x16xf32> -> vector<16x16xf32>
    %c0_65 = arith.constant 0 : index
    %c0_66 = arith.constant 0 : index
    %159 = vector.load %arg13[%c0_65, %c0_66] : memref<1x16xf32, #tpu.memory_space<vmem>>, vector<1x16xf32>
    %160 = vector.broadcast %159 : vector<1x16xf32> to vector<16x16xf32>
    %161 = arith.addf %158, %160 : vector<16x16xf32>
    %162 = math.tanh %161 : vector<16x16xf32>
    %c0_67 = arith.constant 0 : index
    %c0_68 = arith.constant 0 : index
    %163 = vector.load %arg14[%c0_67, %c0_68] : memref<1x16xf32, #tpu.memory_space<vmem>>, vector<1x16xf32>
    %164 = vector.broadcast %163 : vector<1x16xf32> to vector<16x16xf32>
    %165 = arith.mulf %162, %164 : vector<16x16xf32>
    %cst_69 = arith.constant dense<0.000000e+00> : vector<16xf32>
    %166 = vector.multi_reduction <add>, %165, %cst_69 [1] : vector<16x16xf32> to vector<16xf32>
    %167 = vector.shape_cast %166 : vector<16xf32> to vector<16x1xf32>
    %168 = vector.extract_strided_slice %167 {offsets = [0, 0], sizes = [8, 1], strides = [1, 1]} : vector<16x1xf32> to vector<8x1xf32>
    %169 = vector.extract_strided_slice %167 {offsets = [8, 0], sizes = [8, 1], strides = [1, 1]} : vector<16x1xf32> to vector<8x1xf32>
    %170 = arith.maximumf %168, %169 : vector<8x1xf32>
    %171 = arith.subf %168, %170 : vector<8x1xf32>
    %172 = math.exp %171 : vector<8x1xf32>
    %173 = arith.subf %169, %170 : vector<8x1xf32>
    %174 = math.exp %173 : vector<8x1xf32>
    %175 = arith.addf %172, %174 : vector<8x1xf32>
    %176 = tpu.reciprocal %175 {approx = true} : vector<8x1xf32> -> vector<8x1xf32>
    %177 = vector.broadcast %172 : vector<8x1xf32> to vector<8x32xf32>
    %178 = arith.mulf %177, %75 : vector<8x32xf32>
    %179 = vector.broadcast %174 : vector<8x1xf32> to vector<8x32xf32>
    %180 = arith.mulf %179, %155 : vector<8x32xf32>
    %181 = arith.addf %178, %180 : vector<8x32xf32>
    %182 = vector.broadcast %176 : vector<8x1xf32> to vector<8x32xf32>
    %183 = arith.mulf %181, %182 : vector<8x32xf32>
    %c0_70 = arith.constant 0 : index
    %c0_71 = arith.constant 0 : index
    %184 = vector.load %arg15[%c0_70, %c0_71] : memref<32x4xf32, #tpu.memory_space<vmem>>, vector<32x4xf32>
    %cst_72 = arith.constant dense<0.000000e+00> : vector<8x4xf32>
    %185 = tpu.matmul %183, %184, %cst_72 {dimension_numbers = #tpu.dot_dimension_numbers<[1], [0], [0], [1], [0, 0, 1, 1], [], []>} : vector<8x32xf32>, vector<32x4xf32>, vector<8x4xf32> -> vector<8x4xf32>
    %c0_73 = arith.constant 0 : index
    %c0_74 = arith.constant 0 : index
    %186 = vector.load %arg16[%c0_73, %c0_74] : memref<1x4xf32, #tpu.memory_space<vmem>>, vector<1x4xf32>
    %187 = vector.broadcast %186 : vector<1x4xf32> to vector<8x4xf32>
    %188 = arith.addf %185, %187 : vector<8x4xf32>
    %189 = math.absf %188 : vector<8x4xf32>
    %cst_75 = arith.constant 0.000000e+00 : f32
    %190 = vector.broadcast %cst_75 : f32 to vector<8x4xf32>
    %191 = arith.subf %190, %189 : vector<8x4xf32>
    %192 = math.exp %191 : vector<8x4xf32>
    %cst_76 = arith.constant 0.000000e+00 : f32
    %193 = vector.broadcast %cst_76 : f32 to vector<8x4xf32>
    %194 = arith.cmpf oge, %188, %193 : vector<8x4xf32>
    %cst_77 = arith.constant 1.000000e+00 : f32
    %195 = vector.broadcast %cst_77 : f32 to vector<8x4xf32>
    %196 = arith.select %194, %195, %192 : vector<8x4xi1>, vector<8x4xf32>
    %cst_78 = arith.constant 1.000000e+00 : f32
    %197 = vector.broadcast %cst_78 : f32 to vector<8x4xf32>
    %198 = arith.addf %197, %192 : vector<8x4xf32>
    %199 = tpu.reciprocal %198 {approx = true} : vector<8x4xf32> -> vector<8x4xf32>
    %200 = arith.mulf %196, %199 : vector<8x4xf32>
    %cst_79 = arith.constant 0.000000e+00 : f32
    %201 = vector.broadcast %cst_79 : f32 to vector<8x92xf32>
    %202 = tpu.concatenate %183, %200, %201 in 1 : vector<8x32xf32>, vector<8x4xf32>, vector<8x92xf32> -> vector<8x128xf32>
    %c0_80 = arith.constant 0 : index
    %c0_81 = arith.constant 0 : index
    %203 = vector.load %arg18[%c0_80, %c0_81] : memref<8x128xf32, #tpu.memory_space<vmem>>, vector<8x128xf32>
    tpu.vector_store %arg18[%c0_80, %c0_81], %202 {strides = array<i32>} : memref<8x128xf32, #tpu.memory_space<vmem>>, vector<8x128xf32>,
    return
  }
}

</mosaic_0001>

<bundles_post_ra>
// kernel: lflf_gat_forward.3
= control target key start
LH: loop header
LB: loop body
LE: loop exit
PB: predicated region body
PF: predicated region fallthrough
CT: control target
= control target key end

     0   :  { %s1655_s0 = inlined_call_operand.vmem [shape: bf16[12,32], index: 0, kind: input, shape index: {}]   ;;  %s1656_s1 = inlined_call_operand.vmem [shape: bf16[12,4], index: 1, kind: input, shape index: {}]   ;;  %s1657_s2 = inlined_call_operand.vmem [shape: f32[8,12], index: 2, kind: input, shape index: {}]   ;;  %s1658_s3 = inlined_call_operand.vmem [shape: f32[8,12], index: 3, kind: input, shape index: {}]   ;;  %s1659_s4 = inlined_call_operand.vmem [shape: bf16[32,64], index: 4, kind: input, shape index: {}]   ;;  %s1660_s5 = inlined_call_operand.vmem [shape: f32[2,64], index: 5, kind: input, shape index: {}]   ;;  %s1661_s6 = inlined_call_operand.vmem [shape: f32[64,2], index: 6, kind: input, shape index: {}]   ;;  %s1662_s7 = inlined_call_operand.vmem [shape: f32[1,32], index: 7, kind: input, shape index: {}]   ;;  %s1663_s8 = inlined_call_operand.vmem [shape: bf16[4,64], index: 8, kind: input, shape index: {}]   ;;  %s1664_s9 = inlined_call_operand.vmem [shape: f32[2,64], index: 9, kind: input, shape index: {}]   ;;  %s1665_s10 = inlined_call_operand.vmem [shape: f32[64,2], index: 10, kind: input, shape index: {}]   ;;  %s1666_s11 = inlined_call_operand.vmem [shape: f32[1,32], index: 11, kind: input, shape index: {}]   ;;  %s1667_s12 = inlined_call_operand.vmem [shape: f32[32,16], index: 12, kind: input, shape index: {}]   ;;  %s1668_s13 = inlined_call_operand.vmem [shape: f32[1,16], index: 13, kind: input, shape index: {}]   ;;  %s1669_s14 = inlined_call_operand.vmem [shape: f32[1,16], index: 14, kind: input, shape index: {}]   ;;  %s1670_s15 = inlined_call_operand.vmem [shape: f32[32,4], index: 15, kind: input, shape index: {}]   ;;  %s1671_s16 = inlined_call_operand.vmem [shape: f32[1,4], index: 16, kind: input, shape index: {}]   ;;  %s1672_s17 = inlined_call_operand.vmem [shape: f32[2], index: 17, kind: input, shape index: {}]   ;;  %s1673_s18 = inlined_call_operand.vmem [shape: f32[8,128], index: 18, kind: output, shape index: {}]  }
   0x1   :  { %1674 = sst [smem:[#allocation5_spill]] %s1655_s0 }
   0x2   :  { %1675 = sst [smem:[#allocation6_spill]] %s1656_s1 }
   0x3   :  { %1676 = sst [smem:[#allocation7_spill]] %s1657_s2 }
   0x4   :  { %23 = vsyncpa [#allocation3], 0  ;;  %s64_s29 = sshll.u32 %s1672_s17, 4  ;;  %s65_s29 = int_to_ptr.vmem [resolvable:$true] %s64_s29 }
   0x5   :  { %s1279_s30 = scalar_lea.vmem %s65_s29, 16  ;;  %p1284_p1 = scmp.lt.s32.totalorder %s65_s29, %s65_s29 }
   0x6   :  { %p1280_p0 = scmp.ne.s32.totalorder %s65_s29, %s1279_s30  ;;  %p1285_p2 = scmp.lt.s32.totalorder %s1279_s30, %s1279_s30 }
   0x8   :  { %p1286_p3 = por %p1285_p2, %p1284_p1 }
   0xa   :  { %p1287_p4 = pnand %p1286_p3, %p1280_p0 }
   0xc   :  { %1290 = shalt.err (!%p1287_p4)
}
   0xd   :  { %s1293_s0 = smov [#allocation2]  }
   0xe   :  { %67 = dma.vmem_to_smem %s65_s29, 16, %s1293_s0, [#allocation3]  }
   0xf   :  { %1291 = dma.done.wait [#allocation3], 16  }
  0x10   :  { %1292 = vsyncadd [#allocation3], 4294967280 }
  0x11   :  { %71 = sfence }
  0x12   :  { %v1245_v0 = vld [vmem:[%s1659_s4] sm:$0xff]   ;;  %v1294_v1 = vmov 0.0   ;;  %v1246_v2 = vld [vmem:[%s1659_s4 + $0x8] sm:$0xff]   ;;  %vm1295_vm0 = vmmov 0   ;;  %v1296_v5 = vmov 0.0|0.0   ;;  %s1677_s25 = sld [smem:[#allocation5_spill]]  ;;  %v308_v33 = vlaneseq }
  0x13   :  { %1081 = vmatprep.subr.bf16.mxu0 %v1294_v1  ;;  %1085 = vmatprep.mubr.msk.bf16.mxu0 %vm1295_vm0, %v1294_v1  ;;  %v225_v3 = vld [vmem:[%s1661_s6] sm:$0xff]  ;;  %v226_v4 = vld [vmem:[%s1661_s6 + $0x8] sm:$0xff]  ;;  %vm99_vm1 = vcmask 261120   ;;  %v227_v8 = vld [vmem:[%s1661_s6 + $0x10] sm:$0xff]  ;;  %v1297_v17 = vmov 1   ;;  %vm145_vm2 = vcmask 523264  }
  0x14   :  { %1082 = vmatpush3.bf16.msra.mxu0 %v1245_v0  ;;  %1093 = vmatprep.mubr.msk.f32.mxu1 %vm1295_vm0, %v1294_v1  ;;  %v1190_v7 = vpack.c.bf16 %v226_v4, %v225_v3  ;;  %v228_v9 = vld [vmem:[%s1661_s6 + $0x18] sm:$0xff]  ;;  %v229_v11 = vld [vmem:[%s1661_s6 + $0x20] sm:$0xff]  ;;  %v230_v12 = vld [vmem:[%s1661_s6 + $0x28] sm:$0xff]  ;;  %vm363_vm4 = vcmask 1043456   ;;  %v1298_v30 = vmov 0   ;;  %v1477_v34 = vshrl.u32 %v308_v33, 7 }
  0x15   :  { %1083 = vmatprep.subr.bf16.mxu0 %v1294_v1  ;;  %1185 = vmatprep.subr.bf16.mxu1 %v1296_v5  ;;  %v1193_v10 = vpack.c.bf16 %v228_v9, %v227_v8  ;;  %v1196_v13 = vpack.c.bf16 %v230_v12, %v229_v11  ;;  %v231_v14 = vld [vmem:[%s1661_s6 + $0x30] sm:$0xff]  ;;  %v232_v15 = vld [vmem:[%s1661_s6 + $0x38] sm:$0xff]  ;;  %vm1456_vm3 = vmpackc.low %vm145_vm2, %vm145_vm2  ;;  %s1680_s4 = sld [smem:[#allocation7_spill]]  ;;  %vm317_vm7 = vcmask 97280   ;;  %s1299_s24 = smov 96   ;;  %vm444_vm9 = vcmask 1041408  }
  0x16   :  { %v1199_v16 = vpack.c.bf16 %v232_v15, %v231_v14  ;;  %1240 = vset.pattern.permute.xlu0 %v1297_v17  ;;  %1242 = vset.pattern.permute.xlu1 %v1297_v17  ;;  %v144_v27 = vld [vmem:[%s1660_s5] sm:$0x3]  ;;  %v337_v35 = vsub.s32 1, %v1477_v34  ;;  %v310_v37 = vsub.s32 0, %v1477_v34  ;;  %vm376_vm10 = vcmask 195584   ;;  %s1681_s1 = sld [smem:[#allocation6_spill]] }
  0x17   :  { %vm440_vm11 = vcmask 31744   ;;  %v575_v33 = vld [vmem:[%s1665_s10 + $0x30] sm:$0xff]  ;;  %s657_s30 = sld [smem:[#allocation2]]  ;;  %vm884_vm14 = vcmask 130048  }
  0x18   :  { %v1247_v6 = vld [vmem:[%s1677_s25] sm:$0x3f]   ;;  %1084 = vmatpush3.bf16.msra.mxu0 %v1246_v2  ;;  %s1300_s25 = smov 12  }
  0x19   :  { %1189 = vmatprep.subr.bf16.mxu0 %v1296_v5 }
  0x1b   :  { %1086 = vmatmul.mubr.msk.bf16.vlgmr.msra.gmra.mrb[0].mxu0 %vm99_vm1, %v1247_v6  ;;  %v1486_v39 = vld [vmem:[%s1680_s4] sm:$0xff] }
  0x1c   :  { %1191 = vmatpush3.bf16.msra.mxu0 %v1190_v7  ;;  %1112 = vmatprep.mubr.msk.f32.mxu0 %vm1295_vm0, %v1294_v1  ;;  %vm74_vm5 = vcmp.gt.f32.partialorder %v1486_v39, 0.0  ;;  %v782_v39 = vld [vmem:[%s1667_s12 + $0x8] sm:$0xff] }
  0x1d   :  { %1192 = vmatprep.subr.bf16.mxu0 %v1296_v5 }
  0x20   :  { %1194 = vmatpush3.bf16.msra.mxu0 %v1193_v10 }
  0x21   :  { %1195 = vmatprep.subr.bf16.mxu0 %v1296_v5 }
  0x24   :  { %1197 = vmatpush3.bf16.msra.mxu0 %v1196_v13 }
  0x25   :  { %1198 = vmatprep.subr.bf16.mxu0 %v1296_v5 }
  0x28   :  { %1200 = vmatpush3.bf16.msra.mxu0 %v1199_v16  ;;  %v434_v16 = vld [vmem:[%s1663_s8] sm:$0x3]  ;;  %s1026_s8 = sld [smem:[#allocation2 + $0x1]] }
  0x29   :  { %1201 = vmatprep.subr.bf16.mxu0 %v1296_v5 }
  0xee   :  { %v1448_v18 = vpop.f32.mrb[0].mxu0 }
  0xef   :  { %v1087_v19 = vpop.f32.mrb[1].mxu0  ;;  %1113 = vmatmul.mubr.msk.f32.vlgmr.msra.gmra.mrb[4].mxu0 %vm145_vm2, %v1448_v18  ;;  %v364_v25 = vrot.slane %v1448_v18, 4 }
  0xf0   :  { %v1452_v20 = vpop.f32.mrb[2].mxu0  ;;  %1133 = vmatprep.mubr.msk.f32.mxu0 %vm1295_vm0, %v1294_v1 }
  0xf1   :  { %v1186_v22 = vpack.c.bf16 %v1452_v20, %v1448_v18  ;;  %v365_v23 = vrot.slane %v1452_v20, 4  ;;  %v1088_v24 = vpop.f32.mrb[3].mxu0 }
  0xf2   :  { %v1248_v24 = vld [vmem:[%s1681_s1] sm:$0x3f]  }
  0xf3   :  { %1188 = vmatpush3.bf16.xpose.msk.msra.mxu1 %vm1456_vm3, %v1186_v22  ;;  %v366_v26 = vsel %vm363_vm4, %v364_v25, %v365_v23  ;;  %v569_v22 = vld [vmem:[%s1665_s10] sm:$0xff]  ;;  %v570_v23 = vld [vmem:[%s1665_s10 + $0x8] sm:$0xff] }
  0xf4   :  { %1115 = vmatprep.subr.bf16.mxu1 %v1294_v1 }
  0xfa   :  { %1094 = vmatmul.mubr.msk.f32.vlgmr.msra.gmra.mrb[0].mxu1 %vm145_vm2, %v144_v27  ;;  %v572_v27 = vld [vmem:[%s1665_s10 + $0x18] sm:$0xff] }
  0xfb   :  { %1119 = vmatprep.mubr.msk.bf16.mxu1 %vm1295_vm0, %v1294_v1 }
 0x1c2   :  { %v299_v28 = vpop.f32.mrb[4].mxu0 }
 0x1c3   :  { %332 = vperm.xlu0 %1240, %v299_v28   ;;  %v1114_v29 = vpop.f32.mrb[5].mxu0 }
 0x1c4   :  { %v573_v29 = vld [vmem:[%s1665_s10 + $0x20] sm:$0xff] }
 0x1c7   :  { %1241 = vset.pattern.permute.xlu0 %v1298_v30 }
 0x1c8   :  { %305 = vperm.xlu0 %1241, %v299_v28  }
 0x1cc   :  { %1244 = vset.pattern.permute.xlu0 %v1297_v17 }
 0x1cd   :  { %v221_v31 = vpop.f32.mrb[0].mxu1 }
 0x1ce   :  { %v1095_v32 = vpop.f32.mrb[1].mxu1  ;;  %v338_v36 = vrot.slane %v221_v31, %v337_v35  ;;  %v311_v42 = vrot.slane %v221_v31, %v310_v37  ;;  %v574_v31 = vld [vmem:[%s1665_s10 + $0x28] sm:$0xff] }
 0x1cf   :  { %v1212_v32 = vpack.c.bf16 %v574_v31, %v573_v29  ;;  %v781_v29 = vld [vmem:[%s1667_s12] sm:$0xff] }
 0x242   :  { %v333_v38 = vpop.permute.xlu0 %332 }
 0x243   :  { %v339_v40 = vadd.f32 %v338_v36, %v333_v38  ;;  %v576_v36 = vld [vmem:[%s1665_s10 + $0x38] sm:$0xff] }
 0x244   :  { %v1215_v38 = vpack.c.bf16 %v576_v36, %v575_v33  ;;  %v1217_v33 = vpack.c.bf16 %v782_v39, %v781_v29 }
 0x245   :  { %v341_v41 = vmul.f32 0.2, %v339_v40  ;;  %vm340_vm6 = vcmp.ge.f32.partialorder %v339_v40, 0.0 }
 0x247   :  { %v306_v43 = vpop.permute.xlu0 %305  ;;  %v342_v44 = vsel %vm340_vm6, %v339_v40, %v341_v41 }
 0x248   :  { %v312_v45 = vadd.f32 %v311_v42, %v306_v43  ;;  %v343_v46 = vsel %vm74_vm5, %v342_v44, -1e+30 }
 0x249   :  { %v344_v47 = vsel %vm317_vm7, %v343_v46, -inf }
 0x24a   :  { %v314_v48 = vmul.f32 0.2, %v312_v45  ;;  %345 = vmax.xlane.f32.xlu1 %v344_v47  ;;  %vm313_vm8 = vcmp.ge.f32.partialorder %v312_v45, 0.0 }
 0x24c   :  { %v315_v49 = vsel %vm313_vm8, %v312_v45, %v314_v48 }
 0x24d   :  { %v316_v50 = vsel %vm74_vm5, %v315_v49, -1e+30 }
 0x24e   :  { %v318_v51 = vsel %vm317_vm7, %v316_v50, -inf }
 0x24f   :  { %319 = vmax.xlane.f32.xlu1 %v318_v51 }
 0x2d7   :  { %v346_v52 = vpop.xlane.xlu1 %345 }
 0x2d8   :  { %v347_v53 = vsub.f32 %v343_v46, %v346_v52  ;;  %v489_v52 = vld [vmem:[%s1664_s9] sm:$0x3] }
 0x2da   :  { %v348_v54 = vmul.f32 1.442695, %v347_v53 }
 0x2dc   :  { %1249 = vpow2.f32 %v348_v54  ;;  %v320_v55 = vpop.xlane.xlu1 %319 }
 0x2dd   :  { %v321_v56 = vsub.f32 %v316_v50, %v320_v55 }
 0x2df   :  { %v322_v57 = vmul.f32 1.442695, %v321_v56  ;;  %v75_v56 = vld [vmem:[%s1658_s3] sm:$0xff] }
 0x2e1   :  { %1251 = vpow2.f32 %v322_v57  ;;  %v688_v57 = vstv %s1026_s8 }
 0x2e6   :  { %v1250_v58 = vpop.eup %1249 }
 0x2e7   :  { %v350_v59 = vsel %vm74_vm5, %v1250_v58, 0.0 }
 0x2e8   :  { %v351_v60 = vsel %vm317_vm7, %v350_v59, 0.0 }
 0x2e9   :  { %352 = vadd.xlane.f32.xlu1 %v351_v60 }
 0x2eb   :  { %v1252_v61 = vpop.eup %1251 }
 0x2ec   :  { %v324_v62 = vsel %vm74_vm5, %v1252_v61, 0.0 }
 0x2ed   :  { %v325_v63 = vsel %vm317_vm7, %v324_v62, 0.0 }
 0x2ee   :  { %326 = vadd.xlane.f32.xlu0 %v325_v63 }
 0x2fa   :  { %367 = vrot.lane.b32.xlu1 %v364_v25, %s1299_s24  ;;  %v1206_v25 = vpack.c.bf16 %v570_v23, %v569_v22 }
 0x2fe   :  { %369 = vrot.lane.b32.xlu1 %v366_v26, %s1299_s24  ;;  %v571_v26 = vld [vmem:[%s1665_s10 + $0x10] sm:$0xff] }
 0x2ff   :  { %v1209_v28 = vpack.c.bf16 %v572_v27, %v571_v26 }
 0x376   :  { %v353_v0 = vpop.xlane.xlu1 %352 }
 0x377   :  { %v354_v2 = vmax.f32 %v353_v0, 1e-30 }
 0x379   :  { %1253 = vrcp.f32 %v354_v2 }
 0x37a   :  { %v368_v3 = vpop.permute.xlu1 %367 }
 0x37b   :  { %v373_v4 = vsel %vm363_vm4, %v1452_v20, %v368_v3  ;;  %v327_v12 = vpop.xlane.xlu0 %326  ;;  %v446_v20 = vsel %vm444_vm9, %v434_v16, 0 }
 0x37c   :  { %v374_v6 = vpack.c.bf16 %v373_v4, %v1448_v18  ;;  %v328_v13 = vmax.f32 %v327_v12, 1e-30 }
 0x37e   :  { %1116 = vmatpush3.bf16.msra.mxu1 %v374_v6  ;;  %v370_v7 = vpop.permute.xlu1 %369  ;;  %1255 = vrcp.f32 %v328_v13 }
 0x37f   :  { %v375_v8 = vpack.c.bf16 %v370_v7, %v370_v7  ;;  %1117 = vmatprep.subr.bf16.mxu1 %v1294_v1 }
 0x381   :  { %v381_v9 = vsel %vm363_vm4, %v375_v8, 0 }
 0x382   :  { %1118 = vmatpush3.bf16.msra.mxu1 %v381_v9 }
 0x383   :  { %v1254_v10 = vpop.eup %1253  ;;  %1123 = vmatprep.subr.bf16.mxu1 %v1294_v1 }
 0x384   :  { %v356_v11 = vmul.f32 %v1254_v10, %v350_v59  ;;  %v689_v59 = vmul.f32 %v688_v57, %v75_v56 }
 0x386   :  { %358 = vrot.lane.b32.xlu1 %v356_v11, %s1300_s25 }
 0x388   :  { %v1256_v14 = vpop.eup %1255 }
 0x389   :  { %v330_v15 = vmul.f32 %v1256_v14, %v324_v62  ;;  %v658_v62 = vstv %s657_s30  ;;  %s1301_s30 = smov 32  }
 0x38a   :  { %v659_v0 = vmul.f32 %v658_v62, %v75_v56 }
 0x3f8   :  { %v359_v17 = vpop.permute.xlu1 %358 }
 0x3f9   :  { %v361_v18 = vsel %vm317_vm7, %v330_v15, %v359_v17 }
 0x3fa   :  { %v362_v19 = vpack.c.bf16 %v361_v18, %v361_v18 }
 0x3fc   :  { %1120 = vmatmul.mubr.msk.bf16.vlgmr.msra.gmra.mrb[4].mxu1 %vm376_vm10, %v362_v19 }
 0x3fd   :  { %1124 = vmatpush3.bf16.msra.mxu1 %v446_v20  ;;  %1125 = vmatprep.mubr.msk.bf16.mxu1 %vm1295_vm0, %v1294_v1 }
 0x3fe   :  { %1205 = vmatprep.subr.bf16.mxu1 %v1296_v5 }
 0x404   :  { %1126 = vmatmul.mubr.msk.bf16.vlgmr.msra.gmra.mrb[8].mxu1 %vm440_vm11, %v1248_v24 }
 0x405   :  { %1207 = vmatpush3.bf16.msra.mxu1 %v1206_v25  ;;  %1152 = vmatprep.mubr.msk.f32.mxu1 %vm1295_vm0, %v1294_v1 }
 0x406   :  { %1208 = vmatprep.subr.bf16.mxu1 %v1296_v5 }
 0x409   :  { %1210 = vmatpush3.bf16.msra.mxu1 %v1209_v28 }
 0x40a   :  { %1211 = vmatprep.subr.bf16.mxu1 %v1296_v5 }
 0x40d   :  { %1213 = vmatpush3.bf16.msra.mxu1 %v1212_v32 }
 0x40e   :  { %1214 = vmatprep.subr.bf16.mxu1 %v1296_v5 }
 0x411   :  { %1216 = vmatpush3.bf16.msra.mxu1 %v1215_v38 }
 0x412   :  { %1225 = vmatprep.subr.bf16.mxu1 %v1296_v5 }
 0x4cf   :  { %v1553_v40 = vpop.f32.mrb[4].mxu1 }
 0x4d0   :  { %v1121_v41 = vpop.f32.mrb[5].mxu1 }
 0x4d1   :  { %v420_v42 = vpop.f32.mrb[6].mxu1 }
 0x4d2   :  { %v1122_v43 = vpop.f32.mrb[7].mxu1 }
 0x4d7   :  { %v1555_v44 = vpop.f32.mrb[8].mxu1 }
 0x4d8   :  { %v1127_v45 = vpop.f32.mrb[9].mxu1  ;;  %1153 = vmatmul.mubr.msk.f32.vlgmr.msra.gmra.mrb[2].mxu1 %vm145_vm2, %v1555_v44  ;;  %v714_v50 = vrot.slane %v1555_v44, 4 }
 0x4d9   :  { %v1559_v46 = vpop.f32.mrb[10].mxu1  ;;  %1182 = vmatprep.mubr.msk.f32.mxu1 %vm1295_vm0, %v1294_v1  ;;  %v423_v45 = vmul.f32 0.5, %v1553_v40  ;;  %v784_v40 = vld [vmem:[%s1667_s12 + $0x18] sm:$0xff] }
 0x4da   :  { %v1202_v47 = vpack.c.bf16 %v1559_v46, %v1555_v44  ;;  %v715_v48 = vrot.slane %v1559_v46, 4  ;;  %v1128_v49 = vpop.f32.mrb[11].mxu1 }
 0x4dc   :  { %1204 = vmatpush3.bf16.xpose.msk.msra.mxu0 %vm1456_vm3, %v1202_v47  ;;  %v716_v51 = vsel %vm363_vm4, %v714_v50, %v715_v48 }
 0x4dd   :  { %1155 = vmatprep.subr.bf16.mxu0 %v1294_v1 }
 0x4e3   :  { %1134 = vmatmul.mubr.msk.f32.vlgmr.msra.gmra.mrb[6].mxu0 %vm145_vm2, %v489_v52 }
 0x4e4   :  { %1159 = vmatprep.mubr.msk.bf16.mxu0 %vm1295_vm0, %v1294_v1  ;;  %vm1002_vm0 = vcmask 293888  }
 0x5ab   :  { %v643_v53 = vpop.f32.mrb[2].mxu1 }
 0x5ac   :  { %679 = vperm.xlu1 %1242, %v643_v53   ;;  %v1154_v54 = vpop.f32.mrb[3].mxu1 }
 0x5ad   :  { %v1028_v54 = vld [vmem:[%s1666_s11] ss:$0 sm:$0xff] }
 0x5b0   :  { %1243 = vset.pattern.permute.xlu1 %v1298_v30 }
 0x5b1   :  { %649 = vperm.xlu1 %1243, %v643_v53  }
 0x5b6   :  { %v565_v21 = vpop.f32.mrb[6].mxu0 }
 0x5b7   :  { %v1135_v55 = vpop.f32.mrb[7].mxu0  ;;  %v685_v58 = vrot.slane %v565_v21, %v337_v35  ;;  %v655_v30 = vrot.slane %v565_v21, %v310_v37 }
 0x62b   :  { %v680_v60 = vpop.permute.xlu1 %679 }
 0x62c   :  { %v686_v61 = vadd.f32 %v685_v58, %v680_v60 }
 0x62e   :  { %v690_v63 = vadd.f32 %v689_v59, %v686_v61  ;;  %v1029_v59 = vld [vmem:[%s1668_s13] ss:$0 sm:$0xff] }
 0x630   :  { %v650_v2 = vpop.permute.xlu1 %649  ;;  %vm691_vm12 = vcmp.ge.f32.partialorder %v690_v63, 0.0  ;;  %v692_v3 = vmul.f32 0.2, %v690_v63 }
 0x631   :  { %v656_v4 = vadd.f32 %v655_v30, %v650_v2  ;;  %v1032_v30 = vld [vmem:[%s1669_s14] ss:$0 sm:$0xff] }
 0x632   :  { %v693_v6 = vsel %vm691_vm12, %v690_v63, %v692_v3 }
 0x633   :  { %v660_v7 = vadd.f32 %v659_v0, %v656_v4  ;;  %v694_v8 = vsel %vm74_vm5, %v693_v6, -1e+30 }
 0x634   :  { %v695_v35 = vsel %vm317_vm7, %v694_v8, -inf }
 0x635   :  { %696 = vmax.xlane.f32.xlu0 %v695_v35  ;;  %vm661_vm13 = vcmp.ge.f32.partialorder %v660_v7, 0.0  ;;  %v662_v9 = vmul.f32 0.2, %v660_v7  ;;  %v905_v35 = vld [vmem:[%s1670_s15 + $0x8] sm:$0xff] }
 0x637   :  { %v663_v10 = vsel %vm661_vm13, %v660_v7, %v662_v9  ;;  %v906_v9 = vld [vmem:[%s1670_s15 + $0x10] sm:$0xff] }
 0x638   :  { %v664_v34 = vsel %vm74_vm5, %v663_v10, -1e+30 }
 0x639   :  { %v665_v37 = vsel %vm317_vm7, %v664_v34, -inf }
 0x63a   :  { %666 = vmax.xlane.f32.xlu1 %v665_v37 }
 0x6c2   :  { %v697_v11 = vpop.xlane.xlu0 %696 }
 0x6c3   :  { %v698_v12 = vsub.f32 %v694_v8, %v697_v11  ;;  %v904_v8 = vld [vmem:[%s1670_s15] sm:$0xff] }
 0x6c4   :  { %v1226_v10 = vpack.c.bf16 %v905_v35, %v904_v8 }
 0x6c5   :  { %v699_v13 = vmul.f32 1.442695, %v698_v12 }
 0x6c6   :  { %1227 = vmatpush3.bf16.msra.mxu1 %v1226_v10 }
 0x6c7   :  { %1257 = vpow2.f32 %v699_v13  ;;  %v667_v17 = vpop.xlane.xlu1 %666  ;;  %1228 = vmatprep.subr.bf16.mxu1 %v1296_v5  ;;  %v1033_v5 = vld [vmem:[%s1671_s16] ss:$0 sm:$0xff] }
 0x6c8   :  { %v668_v18 = vsub.f32 %v664_v34, %v667_v17  ;;  %v907_v34 = vld [vmem:[%s1670_s15 + $0x18] sm:$0xff] }
 0x6c9   :  { %v1229_v37 = vpack.c.bf16 %v907_v34, %v906_v9 }
 0x6ca   :  { %v669_v19 = vmul.f32 1.442695, %v668_v18 }
 0x6cb   :  { %1230 = vmatpush3.bf16.msra.mxu1 %v1229_v37 }
 0x6cc   :  { %1259 = vpow2.f32 %v669_v19 }
 0x6d1   :  { %v1258_v14 = vpop.eup %1257 }
 0x6d2   :  { %v701_v15 = vsel %vm74_vm5, %v1258_v14, 0.0 }
 0x6d3   :  { %v702_v16 = vsel %vm317_vm7, %v701_v15, 0.0 }
 0x6d4   :  { %703 = vadd.xlane.f32.xlu0 %v702_v16 }
 0x6d6   :  { %v1260_v20 = vpop.eup %1259 }
 0x6d7   :  { %v671_v22 = vsel %vm74_vm5, %v1260_v20, 0.0 }
 0x6d8   :  { %v672_v23 = vsel %vm317_vm7, %v671_v22, 0.0 }
 0x6ea   :  { %717 = vrot.lane.b32.xlu0 %v714_v50, %s1299_s24 }
 0x6ee   :  { %719 = vrot.lane.b32.xlu0 %v716_v51, %s1299_s24  ;;  %v783_v51 = vld [vmem:[%s1667_s12 + $0x10] sm:$0xff] }
 0x6ef   :  { %v1221_v52 = vpack.c.bf16 %v784_v40, %v783_v51 }
 0x70d   :  { %673 = vadd.xlane.f32.xlu0 %v672_v23 }
 0x761   :  { %v704_v24 = vpop.xlane.xlu0 %703 }
 0x762   :  { %v705_v25 = vmax.f32 %v704_v24, 1e-30 }
 0x764   :  { %1261 = vrcp.f32 %v705_v25 }
 0x765   :  { %v718_v26 = vpop.permute.xlu0 %717 }
 0x766   :  { %v723_v27 = vsel %vm363_vm4, %v1559_v46, %v718_v26 }
 0x767   :  { %v724_v28 = vpack.c.bf16 %v723_v27, %v1555_v44 }
 0x769   :  { %1156 = vmatpush3.bf16.msra.mxu0 %v724_v28  ;;  %v720_v31 = vpop.permute.xlu0 %719 }
 0x76a   :  { %v725_v32 = vpack.c.bf16 %v720_v31, %v720_v31  ;;  %1157 = vmatprep.subr.bf16.mxu0 %v1294_v1  ;;  %v1019_v1 = vld [vmem:[%s1662_s7] ss:$0 sm:$0xff] }
 0x76b   :  { %v431_v50 = vadd.f32 %v1019_v1, %v423_v45 }
 0x76c   :  { %v730_v36 = vsel %vm363_vm4, %v725_v32, 0 }
 0x76d   :  { %1158 = vmatpush3.bf16.msra.mxu0 %v730_v36 }
 0x76e   :  { %v1262_v38 = vpop.eup %1261  ;;  %1218 = vmatprep.subr.bf16.mxu0 %v1217_v33 }
 0x76f   :  { %v707_v41 = vmul.f32 %v1262_v38, %v701_v15 }
 0x771   :  { %709 = vrot.lane.b32.xlu0 %v707_v41, %s1300_s25 }
 0x79a   :  { %v674_v42 = vpop.xlane.xlu0 %673 }
 0x79b   :  { %v675_v43 = vmax.f32 %v674_v42, 1e-30 }
 0x79d   :  { %1263 = vrcp.f32 %v675_v43 }
 0x7a7   :  { %v1264_v44 = vpop.eup %1263 }
 0x7a8   :  { %v677_v46 = vmul.f32 %v1264_v44, %v671_v22 }
 0x7e3   :  { %v710_v47 = vpop.permute.xlu0 %709 }
 0x7e4   :  { %v712_v48 = vsel %vm317_vm7, %v677_v46, %v710_v47 }
 0x7e5   :  { %v713_v49 = vpack.c.bf16 %v712_v48, %v712_v48 }
 0x7e7   :  { %1160 = vmatmul.mubr.msk.bf16.vlgmr.msra.gmra.mrb[8].mxu0 %vm376_vm10, %v713_v49 }
 0x7e8   :  { %1171 = vmatprep.mubr.msk.f32.mxu0 %vm99_vm1, %v431_v50  ;;  %1220 = vmatpush3.bf16.msra.mxu0 %v1217_v33 }
 0x7e9   :  { %1222 = vmatprep.subr.bf16.mxu0 %v1221_v52 }
 0x7ec   :  { %1224 = vmatpush3.bf16.msra.mxu0 %v1221_v52 }
 0x8ba   :  { %v766_v53 = vpop.f32.mrb[8].mxu0 }
 0x8bb   :  { %v772_v21 = vmul.f32 0.5, %v766_v53  ;;  %v1161_v55 = vpop.f32.mrb[9].mxu0 }
 0x8bc   :  { %v769_v56 = vpop.f32.mrb[10].mxu0 }
 0x8bd   :  { %v780_v57 = vadd.f32 %v1028_v54, %v772_v21  ;;  %v1162_v58 = vpop.f32.mrb[11].mxu0 }
 0x8bf   :  { %1172 = vmatmul.mubr.msk.f32.vlgmr.msra.gmra.mrb[12].mxu0 %vm99_vm1, %v780_v57 }
 0x992   :  { %v1173_v60 = vpop.f32.mrb[12].mxu0 }
 0x993   :  { %v870_v61 = vadd.f32 %v1173_v60, %v1029_v59  ;;  %v864_v62 = vpop.f32.mrb[13].mxu0 }
 0x994   :  { %v865_v63 = vadd.f32 %v1029_v59, %v864_v62 }
 0x995   :  { %1265 = vtanh.f32 %v870_v61 }
 0x996   :  { %1267 = vtanh.f32 %v865_v63 }
 0x99f   :  { %v1266_v0 = vpop.eup %1265 }
 0x9a0   :  { %v1268_v2 = vpop.eup %1267  ;;  %v883_v3 = vmul.f32 %v1266_v0, %v1032_v30 }
 0x9a1   :  { %v882_v4 = vmul.f32 %v1268_v2, %v1032_v30 }
 0x9a2   :  { %v888_v6 = vsel %vm884_vm14, %v883_v3, 0.0 }
 0x9a3   :  { %889 = vadd.xlane.f32.xlu0 %v888_v6  ;;  %v885_v7 = vsel %vm884_vm14, %v882_v4, 0.0 }
 0x9a4   :  { %886 = vadd.xlane.f32.xlu1 %v885_v7 }
 0xa30   :  { %v890_v11 = vpop.xlane.xlu0 %889 }
 0xa31   :  { %v887_v12 = vpop.xlane.xlu1 %886 }
 0xa32   :  { %v891_v13 = vmax.f32 %v887_v12, %v890_v11 }
 0xa34   :  { %v892_v14 = vsub.f32 %v887_v12, %v891_v13  ;;  %v895_v15 = vsub.f32 %v890_v11, %v891_v13 }
 0xa36   :  { %v893_v16 = vmul.f32 1.442695, %v892_v14  ;;  %v896_v17 = vmul.f32 1.442695, %v895_v15 }
 0xa38   :  { %1269 = vpow2.f32 %v893_v16 }
 0xa39   :  { %1271 = vpow2.f32 %v896_v17 }
 0xa42   :  { %v1270_v18 = vpop.eup %1269 }
 0xa43   :  { %v1272_v19 = vpop.eup %1271  ;;  %v900_v22 = vmul.f32 %v1270_v18, %v431_v50 }
 0xa44   :  { %v898_v20 = vadd.f32 %v1272_v19, %v1270_v18  ;;  %v901_v23 = vmul.f32 %v1272_v19, %v780_v57 }
 0xa46   :  { %1273 = vrcp.f32 %v898_v20  ;;  %v902_v24 = vadd.f32 %v901_v23, %v900_v22 }
 0xa50   :  { %v1274_v25 = vpop.eup %1273 }
 0xa51   :  { %v903_v26 = vmul.f32 %v1274_v25, %v902_v24 }
 0xa53   :  { %1183 = vmatmul.mubr.msk.f32.vlgmr.msra.gmra.mrb[12].mxu1 %vm99_vm1, %v903_v26 }
 0xb26   :  { %v984_v27 = vpop.f32.mrb[12].mxu1 }
 0xb27   :  { %v985_v28 = vadd.f32 %v1033_v5, %v984_v27  ;;  %v1184_v29 = vpop.f32.mrb[13].mxu1 }
 0xb29   :  { %v988_v39 = vand.u32 2147483647, %v985_v28  ;;  %vm992_vm15 = vcmp.ge.f32.partialorder %v985_v28, 0.0 }
 0xb2b   :  { %v989_v31 = vsub.f32 0.0, %v988_v39 }
 0xb2d   :  { %v990_v32 = vmul.f32 1.442695, %v989_v31 }
 0xb2f   :  { %1275 = vpow2.f32 %v990_v32 }
 0xb39   :  { %v1276_v33 = vpop.eup %1275 }
 0xb3a   :  { %v994_v36 = vadd.f32 1.0, %v1276_v33  ;;  %v993_v41 = vsel %vm992_vm15, 1.0, %v1276_v33 }
 0xb3c   :  { %1277 = vrcp.f32 %v994_v36 }
 0xb46   :  { %v1278_v38 = vpop.eup %1277 }
 0xb47   :  { %v996_v42 = vmul.f32 %v1278_v38, %v993_v41 }
 0xb49   :  { %998 = vrot.lane.b32.xlu1 %v996_v42, %s1301_s30 }
 0xbbb   :  { %v999_v43 = vpop.permute.xlu1 %998 }
 0xbbc   :  { %v1001_v44 = vsel %vm99_vm1, %v903_v26, %v999_v43 }
 0xbbd   :  { %v1003_v45 = vsel %vm1002_vm0, %v1001_v44, 0.0 }
 0xbbe   :  { %1004 = vst [vmem:[%s1673_s18] sm:$0xff] %v1003_v45 }
 0xbbf   :  { %1009 = vsyncpa [#allocation3], 1 }

// kernel: lflf_gat_forward.2
= control target key start
LH: loop header
LB: loop body
LE: loop exit
PB: predicated region body
PF: predicated region fallthrough
CT: control target
= control target key end

     0   :  { %s1988_s0 = inlined_call_operand.vmem [shape: bf16[16,8], index: 0, kind: input, shape index: {}]   ;;  %s1989_s1 = inlined_call_operand.vmem [shape: bf16[16,4], index: 1, kind: input, shape index: {}]   ;;  %s1990_s2 = inlined_call_operand.vmem [shape: f32[12,16], index: 2, kind: input, shape index: {}]   ;;  %s1991_s3 = inlined_call_operand.vmem [shape: f32[12,16], index: 3, kind: input, shape index: {}]   ;;  %s1992_s4 = inlined_call_operand.vmem [shape: bf16[8,64], index: 4, kind: input, shape index: {}]   ;;  %s1993_s5 = inlined_call_operand.vmem [shape: f32[2,64], index: 5, kind: input, shape index: {}]   ;;  %s1994_s6 = inlined_call_operand.vmem [shape: f32[64,2], index: 6, kind: input, shape index: {}]   ;;  %s1995_s7 = inlined_call_operand.vmem [shape: f32[1,32], index: 7, kind: input, shape index: {}]   ;;  %s1996_s8 = inlined_call_operand.vmem [shape: bf16[4,64], index: 8, kind: input, shape index: {}]   ;;  %s1997_s9 = inlined_call_operand.vmem [shape: f32[2,64], index: 9, kind: input, shape index: {}]   ;;  %s1998_s10 = inlined_call_operand.vmem [shape: f32[64,2], index: 10, kind: input, shape index: {}]   ;;  %s1999_s11 = inlined_call_operand.vmem [shape: f32[1,32], index: 11, kind: input, shape index: {}]   ;;  %s2000_s12 = inlined_call_operand.vmem [shape: f32[32,16], index: 12, kind: input, shape index: {}]   ;;  %s2001_s13 = inlined_call_operand.vmem [shape: f32[1,16], index: 13, kind: input, shape index: {}]   ;;  %s2002_s14 = inlined_call_operand.vmem [shape: f32[1,16], index: 14, kind: input, shape index: {}]   ;;  %s2003_s15 = inlined_call_operand.vmem [shape: f32[32,4], index: 15, kind: input, shape index: {}]   ;;  %s2004_s16 = inlined_call_operand.vmem [shape: f32[1,4], index: 16, kind: input, shape index: {}]   ;;  %s2005_s17 = inlined_call_operand.vmem [shape: f32[2], index: 17, kind: input, shape index: {}]   ;;  %s2006_s18 = inlined_call_operand.vmem [shape: f32[12,128], index: 18, kind: output, shape index: {}]  }
   0x1   :  { %2008 = sst [smem:[#allocation5_spill]] %s1988_s0 }
   0x2   :  { %2009 = sst [smem:[#allocation6_spill]] %s1989_s1 }
   0x3   :  { %2010 = sst [smem:[#allocation7_spill]] %s1990_s2 }
   0x4   :  { %23 = vsyncpa [#allocation3], 0  ;;  %s64_s29 = sshll.u32 %s2005_s17, 4  ;;  %s65_s29 = int_to_ptr.vmem [resolvable:$true] %s64_s29 }
   0x5   :  { %s1554_s30 = scalar_lea.vmem %s65_s29, 16  ;;  %p1559_p1 = scmp.lt.s32.totalorder %s65_s29, %s65_s29 }
   0x6   :  { %p1555_p0 = scmp.ne.s32.totalorder %s65_s29, %s1554_s30  ;;  %p1560_p2 = scmp.lt.s32.totalorder %s1554_s30, %s1554_s30 }
   0x8   :  { %p1561_p3 = por %p1560_p2, %p1559_p1 }
   0xa   :  { %p1562_p4 = pnand %p1561_p3, %p1555_p0 }
   0xc   :  { %1565 = shalt.err (!%p1562_p4)
}
   0xd   :  { %s1568_s0 = smov [#allocation2]  }
   0xe   :  { %67 = dma.vmem_to_smem %s65_s29, 16, %s1568_s0, [#allocation3]  }
   0xf   :  { %1566 = dma.done.wait [#allocation3], 16  }
  0x10   :  { %1567 = vsyncadd [#allocation3], 4294967280 }
  0x11   :  { %71 = sfence }
  0x12   :  { %v81_v0 = vld [vmem:[%s1992_s4] sm:$0xf]  ;;  %vm91_vm0 = vcmask 1043456   ;;  %v1569_v1 = vmov 0.0   ;;  %vm1570_vm1 = vmmov 0   ;;  %s2011_s21 = sld [smem:[#allocation5_spill]]  ;;  %v310_v34 = vlaneseq }
  0x13   :  { %1298 = vmatprep.subr.bf16.mxu0 %v1569_v1  ;;  %v93_v2 = vsel %vm91_vm0, %v81_v0, 0  ;;  %1300 = vmatprep.mubr.msk.bf16.mxu0 %vm1570_vm1, %v1569_v1  ;;  %vm87_vm2 = vcmask 64512   ;;  %v217_v4 = vld [vmem:[%s1994_s6] sm:$0xff]  ;;  %v218_v5 = vld [vmem:[%s1994_s6 + $0x8] sm:$0xff]  ;;  %v219_v6 = vld [vmem:[%s1994_s6 + $0x10] sm:$0xff]  ;;  %v1571_v16 = vmov 0.0|0.0  }
  0x14   :  { %1299 = vmatpush3.bf16.msra.mxu0 %v93_v2  ;;  %1308 = vmatprep.mubr.msk.f32.mxu1 %vm1570_vm1, %v1569_v1  ;;  %v1410_v7 = vpack.c.bf16 %v218_v5, %v217_v4  ;;  %v220_v8 = vld [vmem:[%s1994_s6 + $0x18] sm:$0xff]  ;;  %v221_v10 = vld [vmem:[%s1994_s6 + $0x20] sm:$0xff]  ;;  %v222_v11 = vld [vmem:[%s1994_s6 + $0x28] sm:$0xff]  ;;  %v1572_v17 = vmov 0   ;;  %vm137_vm3 = vcmask 523264   ;;  %v1573_v26 = vmov 1  }
  0x15   :  { %v1414_v9 = vpack.c.bf16 %v220_v8, %v219_v6  ;;  %v1418_v12 = vpack.c.bf16 %v222_v11, %v221_v10  ;;  %v223_v13 = vld [vmem:[%s1994_s6 + $0x30] sm:$0xff]  ;;  %v224_v14 = vld [vmem:[%s1994_s6 + $0x38] sm:$0xff]  ;;  %1406 = vmatprep.subr.bf16.mxu1 %v1571_v16  ;;  %1470 = vset.pattern.permute.xlu1 %v1572_v17  ;;  %vm1722_vm4 = vmpackc.low %vm137_vm3, %vm137_vm3  ;;  %vm487_vm5 = vcmask 1041408   ;;  %s2014_s23 = sld [smem:[#allocation6_spill]]  ;;  %vm483_vm6 = vcmask 31744   ;;  %s2015_s25 = sld [smem:[#allocation7_spill]] }
  0x16   :  { %1411 = vmatprep.subr.bf16.mxu0 %v1410_v7  ;;  %v1422_v15 = vpack.c.bf16 %v224_v14, %v223_v13  ;;  %v136_v25 = vld [vmem:[%s1993_s5] sm:$0x3]  ;;  %1469 = vset.pattern.permute.xlu0 %v1573_v26  ;;  %v1751_v35 = vshrl.u32 %v310_v34, 7  ;;  %vm324_vm9 = vcmask 130048   ;;  %vm328_vm14 = vcmask 125952   ;;  %v613_v4 = vld [vmem:[%s1998_s10 + $0x8] sm:$0xff] }
  0x17   :  { %v477_v31 = vld [vmem:[%s1996_s8] sm:$0x3]  ;;  %v614_v5 = vld [vmem:[%s1998_s10 + $0x10] sm:$0xff]  ;;  %v617_v10 = vld [vmem:[%s1998_s10 + $0x28] sm:$0xff]  ;;  %s1575_s24 = smov 16   ;;  %vm419_vm15 = vcmask 261120  }
  0x18   :  { %v1494_v3 = vld [vmem:[%s2011_s21] sm:$0xff]   ;;  %v489_v32 = vsel %vm487_vm5, %v477_v31, 0  ;;  %v312_v36 = vsub.s32 0, %v1751_v35  ;;  %v362_v37 = vsub.s32 1, %v1751_v35  ;;  %s711_s27 = sld [smem:[#allocation2]]  ;;  %s1238_s28 = sld [smem:[#allocation2 + $0x1]] }
  0x19   :  { %1301 = vmatmul.mubr.msk.bf16.vlgmr.msra.gmra.mrb[0].mxu0 %vm87_vm2, %v1494_v3  ;;  %v612_v3 = vld [vmem:[%s1998_s10] sm:$0xff] }
  0x1a   :  { %1413 = vmatpush3.bf16.msra.mxu0 %v1410_v7  ;;  %v1430_v6 = vpack.c.bf16 %v613_v4, %v612_v3  ;;  %v615_v7 = vld [vmem:[%s1998_s10 + $0x18] sm:$0xff] }
  0x1b   :  { %1415 = vmatprep.subr.bf16.mxu0 %v1414_v9  ;;  %v1495_v33 = vld [vmem:[%s2014_s23] sm:$0xff]   ;;  %v1768_v52 = vld [vmem:[%s2015_s25 + $0x8] sm:$0xf]  ;;  %v1434_v8 = vpack.c.bf16 %v615_v7, %v614_v5 }
  0x1c   :  { %v1762_v42 = vld [vmem:[%s2015_s25] sm:$0xff]  ;;  %vm76_vm13 = vcmp.gt.f32.partialorder %v1768_v52, 0.0 }
  0x1d   :  { %vm75_vm7 = vcmp.gt.f32.partialorder %v1762_v42, 0.0 }
  0x1e   :  { %1417 = vmatpush3.bf16.msra.mxu0 %v1414_v9  ;;  %v616_v9 = vld [vmem:[%s1998_s10 + $0x20] sm:$0xff] }
  0x1f   :  { %1419 = vmatprep.subr.bf16.mxu0 %v1418_v12  ;;  %v1438_v11 = vpack.c.bf16 %v617_v10, %v616_v9 }
  0x22   :  { %1421 = vmatpush3.bf16.msra.mxu0 %v1418_v12 }
  0x23   :  { %1423 = vmatprep.subr.bf16.mxu0 %v1422_v15 }
  0x26   :  { %1425 = vmatpush3.bf16.msra.mxu0 %v1422_v15 }
  0x27   :  { %1338 = vmatprep.subr.bf16.mxu0 %v1569_v1 }
  0xec   :  { %v1714_v18 = vpop.f32.mrb[0].mxu0 }
  0xed   :  { %v1302_v19 = vpop.f32.mrb[1].mxu0  ;;  %1327 = vmatprep.mubr.msk.f32.mxu0 %vm137_vm3, %v1714_v18 }
  0xee   :  { %v1718_v20 = vpop.f32.mrb[2].mxu0 }
  0xef   :  { %v1471_v22 = vpack.i.bf16 %v1718_v20, %v1714_v18  ;;  %v1407_v23 = vpack.c.bf16 %v1718_v20, %v1714_v18  ;;  %v1303_v24 = vpop.f32.mrb[3].mxu0  ;;  %1328 = vmatmul.mubr.msk.f32.vlgmr.msra.gmra.mrb[4].mxu0 %vm137_vm3, %v1718_v20 }
  0xf0   :  { %1340 = vmatprep.mubr.msk.bf16.mxu0 %vm1570_vm1, %v1569_v1  ;;  %1339 = vmatpush3.bf16.msra.mxu0 %v489_v32 }
  0xf1   :  { %1409 = vmatpush3.bf16.xpose.msk.msra.mxu1 %vm1722_vm4, %v1407_v23  ;;  %1431 = vmatprep.subr.bf16.mxu0 %v1430_v6 }
  0xf2   :  { %1330 = vmatprep.subr.bf16.mxu1 %v1569_v1 }
  0xf3   :  { %1341 = vmatmul.mubr.msk.bf16.vlgmr.msra.gmra.mrb[8].mxu0 %vm483_vm6, %v1495_v33  ;;  %vm1212_vm6 = vcmask 293888  }
  0xf4   :  { %1433 = vmatpush3.bf16.msra.mxu0 %v1430_v6 }
  0xf5   :  { %1435 = vmatprep.subr.bf16.mxu0 %v1434_v8 }
  0xf8   :  { %1309 = vmatmul.mubr.msk.f32.vlgmr.msra.gmra.mrb[0].mxu1 %vm137_vm3, %v136_v25  ;;  %1437 = vmatpush3.bf16.msra.mxu0 %v1434_v8 }
  0xf9   :  { %1331 = vmatpush3.bf16.msra.mxu1 %v1407_v23  ;;  %1334 = vmatprep.mubr.msk.bf16.mxu1 %vm1570_vm1, %v1569_v1 }
  0xfa   :  { %1332 = vmatprep.subr.bf16.mxu1 %v1569_v1  ;;  %1439 = vmatprep.subr.bf16.mxu0 %v1438_v11 }
  0xfc   :  { %1441 = vmatpush3.bf16.msra.mxu0 %v1438_v11 }
 0x1c2   :  { %v1329_v27 = vpop.f32.mrb[4].mxu0 }
 0x1c3   :  { %307 = vperm.xlu1 %1470, %v1329_v27   ;;  %v291_v28 = vpop.f32.mrb[5].mxu0 }
 0x1c4   :  { %353 = vperm.xlu0 %1469, %v291_v28  }
 0x1c7   :  { %302 = vperm.xlu1 %1470, %v291_v28  }
 0x1c8   :  { %357 = vperm.xlu0 %1469, %v1329_v27  }
 0x1cb   :  { %v213_v29 = vpop.f32.mrb[0].mxu1  ;;  %1481 = vset.pattern.permute.xlu1 %v1573_v26 }
 0x1cc   :  { %v1310_v30 = vpop.f32.mrb[1].mxu1  ;;  %1482 = vset.pattern.permute.xlu0 %v1572_v17  ;;  %v313_v38 = vrot.slane %v213_v29, %v312_v36  ;;  %v363_v39 = vrot.slane %v213_v29, %v362_v37 }
 0x242   :  { %v308_v40 = vpop.permute.xlu1 %307 }
 0x243   :  { %v354_v41 = vpop.permute.xlu0 %353  ;;  %v315_v43 = vadd.f32 %v313_v38, %v308_v40 }
 0x244   :  { %v364_v44 = vadd.f32 %v363_v39, %v354_v41 }
 0x245   :  { %v319_v49 = vmul.f32 0.2, %v315_v43  ;;  %vm317_vm11 = vcmp.ge.f32.partialorder %v315_v43, 0.0 }
 0x246   :  { %v368_v45 = vmul.f32 0.2, %v364_v44  ;;  %v303_v46 = vpop.permute.xlu1 %302  ;;  %vm366_vm8 = vcmp.ge.f32.partialorder %v364_v44, 0.0 }
 0x247   :  { %v314_v47 = vadd.f32 %v313_v38, %v303_v46  ;;  %v358_v48 = vpop.permute.xlu0 %357  ;;  %v321_v60 = vsel %vm317_vm11, %v315_v43, %v319_v49  ;;  %v618_v46 = vld [vmem:[%s1998_s10 + $0x30] sm:$0xff]  ;;  %v1819_v49 = vpop.f32.mrb[8].mxu0 }
 0x248   :  { %v365_v50 = vadd.f32 %v363_v39, %v358_v48  ;;  %v370_v51 = vsel %vm366_vm8, %v364_v44, %v368_v45  ;;  %v323_v0 = vsel %vm76_vm13, %v321_v60, -1e+30  ;;  %1367 = vmatprep.mubr.msk.f32.mxu0 %vm137_vm3, %v1819_v49 }
 0x249   :  { %v318_v53 = vmul.f32 0.2, %v314_v47  ;;  %v372_v54 = vsel %vm75_vm7, %v370_v51, -1e+30  ;;  %vm316_vm10 = vcmp.ge.f32.partialorder %v314_v47, 0.0  ;;  %v329_v2 = vsel %vm328_vm14, %v323_v0, -inf }
 0x24a   :  { %v369_v55 = vmul.f32 0.2, %v365_v50  ;;  %v374_v56 = vsel %vm324_vm9, %v372_v54, -inf  ;;  %vm367_vm12 = vcmp.ge.f32.partialorder %v365_v50, 0.0 }
 0x24b   :  { %375 = vmax.xlane.f32.xlu0 %v374_v56  ;;  %v320_v57 = vsel %vm316_vm10, %v314_v47, %v318_v53  ;;  %v619_v47 = vld [vmem:[%s1998_s10 + $0x38] sm:$0xff]  ;;  %s1574_s10 = smov 96  }
 0x24c   :  { %v371_v58 = vsel %vm367_vm12, %v365_v50, %v369_v55  ;;  %v322_v59 = vsel %vm75_vm7, %v320_v57, -1e+30  ;;  %v1442_v48 = vpack.c.bf16 %v619_v47, %v618_v46  ;;  %v1342_v50 = vpop.f32.mrb[9].mxu0 }
 0x24d   :  { %v373_v61 = vsel %vm76_vm13, %v371_v58, -1e+30  ;;  %v325_v62 = vsel %vm324_vm9, %v322_v59, -inf  ;;  %v1823_v51 = vpop.f32.mrb[10].mxu0 }
 0x24e   :  { %v377_v63 = vsel %vm328_vm14, %v373_v61, -inf  ;;  %1443 = vmatprep.subr.bf16.mxu0 %v1442_v48  ;;  %v1484_v53 = vpack.i.bf16 %v1823_v51, %v1819_v49  ;;  %v1343_v55 = vpop.f32.mrb[11].mxu0 }
 0x24f   :  { %378 = vmax.xlane.f32.xlu1 %v377_v63  ;;  %326 = vmax.xlane.f32.xlu0 %v325_v62 }
 0x250   :  { %1445 = vmatpush3.bf16.msra.mxu0 %v1442_v48 }
 0x253   :  { %330 = vmax.xlane.f32.xlu0 %v329_v2  ;;  %1368 = vmatmul.mubr.msk.f32.vlgmr.msra.gmra.mrb[6].mxu0 %vm137_vm3, %v1823_v51 }
 0x2d8   :  { %v376_v12 = vpop.xlane.xlu0 %375 }
 0x2d9   :  { %v380_v13 = vsub.f32 %v372_v54, %v376_v12  ;;  %v1427_v54 = vpack.c.bf16 %v1823_v51, %v1819_v49 }
 0x2db   :  { %v382_v14 = vmul.f32 1.442695, %v380_v13 }
 0x2dc   :  { %v379_v15 = vpop.xlane.xlu1 %378  ;;  %v327_v19 = vpop.xlane.xlu0 %326 }
 0x2dd   :  { %1496 = vpow2.f32 %v382_v14  ;;  %v381_v23 = vsub.f32 %v373_v61, %v379_v15  ;;  %v332_v24 = vsub.f32 %v322_v59, %v327_v19 }
 0x2df   :  { %v384_v25 = vmul.f32 1.442695, %v381_v23  ;;  %v334_v26 = vmul.f32 1.442695, %v332_v24 }
 0x2e0   :  { %v331_v27 = vpop.xlane.xlu0 %330 }
 0x2e1   :  { %1498 = vpow2.f32 %v384_v25  ;;  %v333_v28 = vsub.f32 %v323_v0, %v331_v27 }
 0x2e2   :  { %1500 = vpow2.f32 %v334_v26 }
 0x2e3   :  { %v336_v29 = vmul.f32 1.442695, %v333_v28 }
 0x2e5   :  { %1502 = vpow2.f32 %v336_v29 }
 0x2e7   :  { %v1497_v30 = vpop.eup %1496 }
 0x2e8   :  { %v386_v31 = vsel %vm75_vm7, %v1497_v30, 0.0 }
 0x2e9   :  { %v388_v32 = vsel %vm324_vm9, %v386_v31, 0.0 }
 0x2ea   :  { %389 = vadd.xlane.f32.xlu1 %v388_v32 }
 0x2eb   :  { %v1499_v33 = vpop.eup %1498 }
 0x2ec   :  { %v1501_v34 = vpop.eup %1500  ;;  %v387_v38 = vsel %vm76_vm13, %v1499_v33, 0.0  ;;  %v77_v33 = vld [vmem:[%s1991_s3] sm:$0xff] }
 0x2ed   :  { %v391_v39 = vsel %vm328_vm14, %v387_v38, 0.0  ;;  %v338_v40 = vsel %vm75_vm7, %v1501_v34, 0.0  ;;  %v78_v34 = vld [vmem:[%s1991_s3 + $0x8] sm:$0xf] }
 0x2ee   :  { %392 = vadd.xlane.f32.xlu0 %v391_v39  ;;  %v340_v41 = vsel %vm324_vm9, %v338_v40, 0.0  ;;  %v766_v39 = vstv %s1238_s28 }
 0x2ef   :  { %v1503_v43 = vpop.eup %1502  ;;  %341 = vadd.xlane.f32.xlu1 %v340_v41  ;;  %v767_v46 = vmul.f32 %v766_v39, %v77_v33  ;;  %v768_v47 = vmul.f32 %v766_v39, %v78_v34 }
 0x2f0   :  { %v339_v44 = vsel %vm76_vm13, %v1503_v43, 0.0 }
 0x2f1   :  { %v343_v45 = vsel %vm328_vm14, %v339_v44, 0.0 }
 0x2f2   :  { %344 = vadd.xlane.f32.xlu0 %v343_v45 }
 0x300   :  { %1472 = vrot.lane.b32.xlu1 %v1471_v22, %s1574_s10 }
 0x326   :  { %v1369_v20 = vpop.f32.mrb[6].mxu0 }
 0x327   :  { %v686_v22 = vpop.f32.mrb[7].mxu0 }
 0x328   :  { %752 = vperm.xlu1 %1481, %v686_v22  }
 0x32c   :  { %756 = vperm.xlu1 %1481, %v1369_v20  }
 0x330   :  { %1483 = vset.pattern.permute.xlu1 %v1572_v17  ;;  %v532_v17 = vld [vmem:[%s1997_s9] sm:$0x3] }
 0x331   :  { %702 = vperm.xlu1 %1483, %v1369_v20  }
 0x377   :  { %v390_v56 = vpop.xlane.xlu1 %389 }
 0x378   :  { %v394_v57 = vmax.f32 %v390_v56, 1e-30 }
 0x37a   :  { %1504 = vrcp.f32 %v394_v57 }
 0x37b   :  { %v393_v58 = vpop.xlane.xlu0 %392 }
 0x37c   :  { %v342_v59 = vpop.xlane.xlu1 %341  ;;  %v395_v60 = vmax.f32 %v393_v58, 1e-30 }
 0x37d   :  { %v346_v7 = vmax.f32 %v342_v59, 1e-30 }
 0x37e   :  { %1506 = vrcp.f32 %v395_v60 }
 0x37f   :  { %v345_v6 = vpop.xlane.xlu0 %344  ;;  %1508 = vrcp.f32 %v346_v7 }
 0x380   :  { %v1473_v61 = vpop.permute.xlu1 %1472  ;;  %v347_v8 = vmax.f32 %v345_v6, 1e-30 }
 0x381   :  { %v1475_v62 = vunpack.i.h.bf16 %v1473_v61  ;;  %v1474_v63 = vunpack.i.l.bf16 %v1473_v61 }
 0x382   :  { %1510 = vrcp.f32 %v347_v8 }
 0x383   :  { %v418_v0 = vpack.c.bf16 %v1475_v62, %v1474_v63 }
 0x384   :  { %v1505_v2 = vpop.eup %1504 }
 0x385   :  { %1333 = vmatpush3.bf16.msra.mxu1 %v418_v0  ;;  %v398_v4 = vmul.f32 %v1505_v2, %v386_v31  ;;  %v1858_v31 = vld [vmem:[%s1995_s7] ss:$0 sm:$0xff] }
 0x386   :  { %1426 = vmatprep.subr.bf16.mxu1 %v1571_v16 }
 0x388   :  { %v1507_v3 = vpop.eup %1506 }
 0x389   :  { %v399_v5 = vmul.f32 %v1507_v3, %v387_v38  ;;  %v1509_v9 = vpop.eup %1508  ;;  %v712_v38 = vstv %s711_s27 }
 0x38a   :  { %v350_v12 = vmul.f32 %v1509_v9, %v338_v40  ;;  %v713_v41 = vmul.f32 %v712_v38, %v77_v33  ;;  %v714_v43 = vmul.f32 %v712_v38, %v78_v34 }
 0x38b   :  { %v1476_v18 = vpack.i.bf16 %v399_v5, %v398_v4 }
 0x38c   :  { %v1511_v10 = vpop.eup %1510 }
 0x38d   :  { %1477 = vrot.lane.b32.xlu0 %v1476_v18, %s1575_s24  ;;  %v351_v13 = vmul.f32 %v1511_v10, %v339_v44 }
 0x391   :  { %697 = vperm.xlu0 %1482, %v686_v22  }
 0x3a7   :  { %v753_v21 = vpop.permute.xlu1 %752 }
 0x3ab   :  { %v757_v30 = vpop.permute.xlu1 %756 }
 0x3b0   :  { %v703_v50 = vpop.permute.xlu1 %702 }
 0x3ff   :  { %v1478_v11 = vpop.permute.xlu0 %1477 }
 0x400   :  { %v1480_v14 = vunpack.i.h.bf16 %v1478_v11  ;;  %v1479_v15 = vunpack.i.l.bf16 %v1478_v11 }
 0x402   :  { %v409_v19 = vsel %vm324_vm9, %v351_v13, %v1480_v14  ;;  %v408_v23 = vsel %vm324_vm9, %v350_v12, %v1479_v15 }
 0x403   :  { %v410_v24 = vpack.c.bf16 %v409_v19, %v408_v23 }
 0x405   :  { %1335 = vmatmul.mubr.msk.bf16.vlgmr.msra.gmra.mrb[4].mxu1 %vm419_vm15, %v410_v24 }
 0x406   :  { %1429 = vmatpush3.bf16.xpose.msk.msra.mxu1 %vm1722_vm4, %v1427_v54  ;;  %1348 = vmatprep.mubr.msk.f32.mxu1 %vm1570_vm1, %v1569_v1 }
 0x407   :  { %1370 = vmatprep.subr.bf16.mxu1 %v1569_v1 }
 0x40d   :  { %1349 = vmatmul.mubr.msk.f32.vlgmr.msra.gmra.mrb[2].mxu1 %vm137_vm3, %v532_v17 }
 0x40e   :  { %1371 = vmatpush3.bf16.msra.mxu1 %v1427_v54  ;;  %1374 = vmatprep.mubr.msk.bf16.mxu1 %vm1570_vm1, %v1569_v1 }
 0x40f   :  { %1372 = vmatprep.subr.bf16.mxu1 %v1569_v1 }
 0x410   :  { %v698_v54 = vpop.permute.xlu0 %697 }
 0x4d8   :  { %v1853_v25 = vpop.f32.mrb[4].mxu1 }
 0x4d9   :  { %v1336_v26 = vpop.f32.mrb[5].mxu1 }
 0x4da   :  { %v460_v27 = vpop.f32.mrb[6].mxu1 }
 0x4db   :  { %v465_v28 = vmul.f32 0.5, %v460_v27  ;;  %v1337_v29 = vpop.f32.mrb[7].mxu1 }
 0x4dd   :  { %v1861_v32 = vadd.f32 %v1858_v31, %v465_v28 }
 0x4e0   :  { %v608_v40 = vpop.f32.mrb[2].mxu1 }
 0x4e1   :  { %v708_v44 = vrot.slane %v608_v40, %v312_v36  ;;  %v762_v45 = vrot.slane %v608_v40, %v362_v37  ;;  %v1350_v48 = vpop.f32.mrb[3].mxu1 }
 0x4e3   :  { %v709_v55 = vadd.f32 %v708_v44, %v698_v54  ;;  %v710_v56 = vadd.f32 %v708_v44, %v703_v50  ;;  %v763_v57 = vadd.f32 %v762_v45, %v753_v21  ;;  %v764_v58 = vadd.f32 %v762_v45, %v757_v30 }
 0x4e5   :  { %v715_v59 = vadd.f32 %v713_v41, %v709_v55  ;;  %v716_v60 = vadd.f32 %v714_v43, %v710_v56  ;;  %v769_v61 = vadd.f32 %v767_v46, %v763_v57  ;;  %v770_v62 = vadd.f32 %v768_v47, %v764_v58 }
 0x4e7   :  { %vm772_vm2 = vcmp.ge.f32.partialorder %v770_v62, 0.0  ;;  %v774_v63 = vmul.f32 0.2, %v770_v62  ;;  %vm771_vm3 = vcmp.ge.f32.partialorder %v769_v61, 0.0  ;;  %v773_v36 = vmul.f32 0.2, %v769_v61 }
 0x4e8   :  { %vm718_vm4 = vcmp.ge.f32.partialorder %v716_v60, 0.0  ;;  %v720_v35 = vmul.f32 0.2, %v716_v60  ;;  %vm717_vm5 = vcmp.ge.f32.partialorder %v715_v59, 0.0  ;;  %v719_v37 = vmul.f32 0.2, %v715_v59 }
 0x4e9   :  { %v776_v0 = vsel %vm772_vm2, %v770_v62, %v774_v63  ;;  %v775_v2 = vsel %vm771_vm3, %v769_v61, %v773_v36  ;;  %v886_v36 = vld [vmem:[%s2000_s12] sm:$0xff] }
 0x4ea   :  { %v778_v3 = vsel %vm76_vm13, %v776_v0, -1e+30  ;;  %v777_v4 = vsel %vm75_vm7, %v775_v2, -1e+30  ;;  %v722_v5 = vsel %vm718_vm4, %v716_v60, %v720_v35  ;;  %v721_v18 = vsel %vm717_vm5, %v715_v59, %v719_v37  ;;  %v887_v35 = vld [vmem:[%s2000_s12 + $0x8] sm:$0xff] }
 0x4eb   :  { %v782_v20 = vsel %vm328_vm14, %v778_v3, -inf  ;;  %v779_v22 = vsel %vm324_vm9, %v777_v4, -inf  ;;  %v724_v6 = vsel %vm76_vm13, %v722_v5, -1e+30  ;;  %v723_v7 = vsel %vm75_vm7, %v721_v18, -1e+30 }
 0x4ec   :  { %783 = vmax.xlane.f32.xlu0 %v782_v20  ;;  %780 = vmax.xlane.f32.xlu1 %v779_v22  ;;  %v728_v8 = vsel %vm328_vm14, %v724_v6, -inf  ;;  %v725_v9 = vsel %vm324_vm9, %v723_v7, -inf  ;;  %v1447_v18 = vpack.c.bf16 %v887_v35, %v886_v36  ;;  %v888_v22 = vld [vmem:[%s2000_s12 + $0x10] sm:$0xff] }
 0x4f0   :  { %729 = vmax.xlane.f32.xlu1 %v728_v8  ;;  %726 = vmax.xlane.f32.xlu0 %v725_v9  ;;  %v464_v8 = vmul.f32 0.5, %v1853_v25 }
 0x4f2   :  { %v1923_v9 = vadd.f32 %v1858_v31, %v464_v8  ;;  %v1092_v8 = vld [vmem:[%s2003_s15] sm:$0xff] }
 0x579   :  { %v784_v10 = vpop.xlane.xlu0 %783  ;;  %v781_v11 = vpop.xlane.xlu1 %780 }
 0x57a   :  { %v786_v12 = vsub.f32 %v778_v3, %v784_v10  ;;  %v785_v13 = vsub.f32 %v777_v4, %v781_v11  ;;  %v1240_v11 = vld [vmem:[%s1999_s11] ss:$0 sm:$0xff] }
 0x57c   :  { %v789_v14 = vmul.f32 1.442695, %v786_v12  ;;  %v787_v15 = vmul.f32 1.442695, %v785_v13 }
 0x57d   :  { %v730_v19 = vpop.xlane.xlu1 %729  ;;  %v727_v23 = vpop.xlane.xlu0 %726 }
 0x57e   :  { %1512 = vpow2.f32 %v789_v14  ;;  %v732_v24 = vsub.f32 %v724_v6, %v730_v19  ;;  %v731_v17 = vsub.f32 %v723_v7, %v727_v23  ;;  %v889_v6 = vld [vmem:[%s2000_s12 + $0x18] sm:$0xff] }
 0x57f   :  { %1514 = vpow2.f32 %v787_v15  ;;  %v1450_v7 = vpack.c.bf16 %v889_v6, %v888_v22 }
 0x580   :  { %v735_v21 = vmul.f32 1.442695, %v732_v24  ;;  %v733_v26 = vmul.f32 1.442695, %v731_v17 }
 0x582   :  { %1516 = vpow2.f32 %v735_v21 }
 0x583   :  { %1518 = vpow2.f32 %v733_v26 }
 0x588   :  { %v1513_v27 = vpop.eup %1512 }
 0x589   :  { %v1515_v28 = vpop.eup %1514  ;;  %v792_v29 = vsel %vm76_vm13, %v1513_v27, 0.0  ;;  %v1241_v27 = vld [vmem:[%s2001_s13] ss:$0 sm:$0xff] }
 0x58a   :  { %v796_v30 = vsel %vm328_vm14, %v792_v29, 0.0  ;;  %v791_v33 = vsel %vm75_vm7, %v1515_v28, 0.0 }
 0x58b   :  { %797 = vadd.xlane.f32.xlu1 %v796_v30  ;;  %v793_v34 = vsel %vm324_vm9, %v791_v33, 0.0 }
 0x58c   :  { %v1517_v38 = vpop.eup %1516  ;;  %794 = vadd.xlane.f32.xlu0 %v793_v34 }
 0x58d   :  { %v1519_v39 = vpop.eup %1518  ;;  %v738_v40 = vsel %vm76_vm13, %v1517_v38, 0.0 }
 0x58e   :  { %v742_v41 = vsel %vm328_vm14, %v738_v40, 0.0  ;;  %v737_v43 = vsel %vm75_vm7, %v1519_v39, 0.0 }
 0x58f   :  { %743 = vadd.xlane.f32.xlu1 %v742_v41  ;;  %v739_v44 = vsel %vm324_vm9, %v737_v43, 0.0 }
 0x590   :  { %740 = vadd.xlane.f32.xlu0 %v739_v44 }
 0x5a6   :  { %1485 = vrot.lane.b32.xlu0 %v1484_v53, %s1574_s10 }
 0x618   :  { %v798_v45 = vpop.xlane.xlu1 %797 }
 0x619   :  { %v800_v46 = vmax.f32 %v798_v45, 1e-30  ;;  %v795_v47 = vpop.xlane.xlu0 %794 }
 0x61a   :  { %v799_v48 = vmax.f32 %v795_v47, 1e-30 }
 0x61b   :  { %1520 = vrcp.f32 %v800_v46 }
 0x61c   :  { %1522 = vrcp.f32 %v799_v48  ;;  %v744_v51 = vpop.xlane.xlu1 %743 }
 0x61d   :  { %v741_v52 = vpop.xlane.xlu0 %740  ;;  %v746_v53 = vmax.f32 %v744_v51, 1e-30 }
 0x61e   :  { %v745_v60 = vmax.f32 %v741_v52, 1e-30 }
 0x61f   :  { %1524 = vrcp.f32 %v746_v53 }
 0x620   :  { %1526 = vrcp.f32 %v745_v60 }
 0x621   :  { %v1486_v50 = vpop.permute.xlu0 %1485 }
 0x622   :  { %v1488_v54 = vunpack.i.h.bf16 %v1486_v50  ;;  %v1487_v42 = vunpack.i.l.bf16 %v1486_v50 }
 0x624   :  { %v823_v55 = vpack.c.bf16 %v1488_v54, %v1487_v42 }
 0x625   :  { %v1521_v56 = vpop.eup %1520 }
 0x626   :  { %v1523_v57 = vpop.eup %1522  ;;  %1373 = vmatpush3.bf16.msra.mxu1 %v823_v55  ;;  %v804_v58 = vmul.f32 %v1521_v56, %v792_v29 }
 0x627   :  { %v803_v59 = vmul.f32 %v1523_v57, %v791_v33  ;;  %1446 = vmatprep.subr.bf16.mxu1 %v1571_v16 }
 0x629   :  { %v1489_v49 = vpack.i.bf16 %v804_v58, %v803_v59  ;;  %v1525_v61 = vpop.eup %1524 }
 0x62a   :  { %v1527_v62 = vpop.eup %1526  ;;  %v750_v37 = vmul.f32 %v1525_v61, %v738_v40  ;;  %v1245_v40 = vld [vmem:[%s2002_s14] ss:$0 sm:$0xff] }
 0x62b   :  { %1490 = vrot.lane.b32.xlu1 %v1489_v49, %s1575_s24  ;;  %v749_v3 = vmul.f32 %v1527_v62, %v737_v43 }
 0x69d   :  { %v1491_v63 = vpop.permute.xlu1 %1490 }
 0x69e   :  { %v1493_v0 = vunpack.i.h.bf16 %v1491_v63  ;;  %v1492_v2 = vunpack.i.l.bf16 %v1491_v63 }
 0x6a0   :  { %v814_v4 = vsel %vm324_vm9, %v750_v37, %v1493_v0  ;;  %v813_v5 = vsel %vm324_vm9, %v749_v3, %v1492_v2 }
 0x6a1   :  { %v815_v20 = vpack.c.bf16 %v814_v4, %v813_v5 }
 0x6a3   :  { %1375 = vmatmul.mubr.msk.bf16.vlgmr.msra.gmra.mrb[8].mxu1 %vm419_vm15, %v815_v20 }
 0x6a4   :  { %1448 = vmatpush3.bf16.msra.mxu1 %v1447_v18  ;;  %1386 = vmatprep.mubr.msk.f32.mxu1 %vm1570_vm1, %v1569_v1 }
 0x6a5   :  { %1449 = vmatprep.subr.bf16.mxu1 %v1571_v16 }
 0x6a8   :  { %1451 = vmatpush3.bf16.msra.mxu1 %v1450_v7 }
 0x6ab   :  { %1387 = vmatmul.mubr.msk.f32.vlgmr.msra.gmra.mrb[12].mxu1 %vm419_vm15, %v1923_v9 }
 0x6ac   :  { %1389 = vmatprep.mubr.msk.f32.mxu1 %vm1570_vm1, %v1569_v1 }
 0x776   :  { %v861_v10 = vpop.f32.mrb[8].mxu1 }
 0x777   :  { %v868_v12 = vmul.f32 0.5, %v861_v10  ;;  %v1376_v13 = vpop.f32.mrb[9].mxu1  ;;  %v1093_v10 = vld [vmem:[%s2003_s15 + $0x8] sm:$0xff] }
 0x778   :  { %v864_v25 = vpop.f32.mrb[10].mxu1  ;;  %v1094_v13 = vld [vmem:[%s2003_s15 + $0x10] sm:$0xff] }
 0x779   :  { %v877_v14 = vadd.f32 %v1240_v11, %v868_v12  ;;  %v869_v16 = vmul.f32 0.5, %v864_v25  ;;  %v1377_v15 = vpop.f32.mrb[11].mxu1  ;;  %v1095_v25 = vld [vmem:[%s2003_s15 + $0x18] sm:$0xff] }
 0x77b   :  { %v1932_v19 = vrot.slane %v877_v14, 4  ;;  %v878_v31 = vadd.f32 %v1240_v11, %v869_v16  ;;  %v1452_v11 = vpack.c.bf16 %v1093_v10, %v1092_v8  ;;  %v1456_v16 = vpack.c.bf16 %v1095_v25, %v1094_v13 }
 0x77d   :  { %v882_v23 = vrot.slane %v878_v31, 4  ;;  %v885_v24 = vsel %vm91_vm0, %v1861_v32, %v1932_v19  ;;  %1453 = vmatprep.subr.bf16.mxu0 %v1452_v11 }
 0x77e   :  { %v971_v17 = vpop.f32.mrb[12].mxu1  ;;  %1390 = vmatmul.mubr.msk.f32.gmra.mrb[14].mxu1 %vm419_vm15, %v885_v24  ;;  %1455 = vmatpush3.bf16.msra.mxu0 %v1452_v11 }
 0x77f   :  { %v1388_v21 = vpop.f32.mrb[13].mxu1  ;;  %1392 = vmatprep.mubr.msk.f32.mxu1 %vm1570_vm1, %v1569_v1  ;;  %v1942_v26 = vsel %vm91_vm0, %v1932_v19, %v882_v23  ;;  %v972_v33 = vadd.f32 %v1241_v27, %v971_v17  ;;  %1457 = vmatprep.subr.bf16.mxu0 %v1456_v16 }
 0x782   :  { %1393 = vmatmul.mubr.msk.f32.gmra.mrb[16].mxu1 %vm419_vm15, %v1942_v26  ;;  %1459 = vmatpush3.bf16.msra.mxu0 %v1456_v16 }
 0x851   :  { %v976_v28 = vpop.f32.mrb[14].mxu1 }
 0x852   :  { %v977_v29 = vadd.f32 %v1241_v27, %v976_v28  ;;  %v1391_v30 = vpop.f32.mrb[15].mxu1 }
 0x854   :  { %1528 = vtanh.f32 %v977_v29 }
 0x855   :  { %v981_v34 = vpop.f32.mrb[16].mxu1  ;;  %1530 = vtanh.f32 %v972_v33 }
 0x856   :  { %v982_v38 = vadd.f32 %v1241_v27, %v981_v34  ;;  %v1394_v39 = vpop.f32.mrb[17].mxu1 }
 0x858   :  { %1532 = vtanh.f32 %v982_v38 }
 0x85e   :  { %v1529_v1 = vpop.eup %1528 }
 0x85f   :  { %v996_v41 = vmul.f32 %v1529_v1, %v1245_v40  ;;  %v1531_v43 = vpop.eup %1530 }
 0x860   :  { %v995_v48 = vmul.f32 %v1531_v43, %v1245_v40 }
 0x861   :  { %v1001_v44 = vsel %vm324_vm9, %v996_v41, 0.0 }
 0x862   :  { %v1533_v45 = vpop.eup %1532  ;;  %1002 = vadd.xlane.f32.xlu1 %v1001_v44  ;;  %v998_v52 = vsel %vm324_vm9, %v995_v48, 0.0 }
 0x863   :  { %v997_v46 = vmul.f32 %v1533_v45, %v1245_v40 }
 0x865   :  { %v1004_v47 = vsel %vm324_vm9, %v997_v46, 0.0 }
 0x866   :  { %1005 = vadd.xlane.f32.xlu0 %v1004_v47 }
 0x86a   :  { %999 = vadd.xlane.f32.xlu0 %v998_v52 }
 0x8ef   :  { %v1003_v50 = vpop.xlane.xlu1 %1002 }
 0x8f0   :  { %v1009_v42 = vrot.slane %v1003_v50, 4 }
 0x8f3   :  { %v1006_v54 = vpop.xlane.xlu0 %1005 }
 0x8f4   :  { %v1010_v55 = vrot.slane %v1006_v54, 4 }
 0x8f6   :  { %v1015_v56 = vmax.f32 %v1003_v50, %v1010_v55  ;;  %v1011_v57 = vsel %vm91_vm0, %v1009_v42, %v1010_v55 }
 0x8f7   :  { %v1000_v58 = vpop.xlane.xlu0 %999 }
 0x8f8   :  { %v1014_v59 = vmax.f32 %v1000_v58, %v1011_v57  ;;  %v1025_v49 = vrot.slane %v1015_v56, 4  ;;  %v1017_v53 = vsub.f32 %v1003_v50, %v1015_v56 }
 0x8fa   :  { %v1024_v51 = vrot.slane %v1014_v59, 4  ;;  %v1016_v60 = vsub.f32 %v1000_v58, %v1014_v59  ;;  %v1020_v35 = vmul.f32 1.442695, %v1017_v53 }
 0x8fc   :  { %v1026_v61 = vsel %vm91_vm0, %v1024_v51, %v1025_v49  ;;  %v1029_v62 = vsub.f32 %v1003_v50, %v1024_v51  ;;  %v1018_v0 = vmul.f32 1.442695, %v1016_v60 }
 0x8fd   :  { %v1030_v63 = vsub.f32 %v1006_v54, %v1026_v61 }
 0x8fe   :  { %v1031_v36 = vmul.f32 1.442695, %v1029_v62 }
 0x8ff   :  { %v1033_v37 = vmul.f32 1.442695, %v1030_v63 }
 0x900   :  { %1534 = vpow2.f32 %v1031_v36 }
 0x901   :  { %1536 = vpow2.f32 %v1033_v37 }
 0x902   :  { %1538 = vpow2.f32 %v1020_v35 }
 0x903   :  { %1540 = vpow2.f32 %v1018_v0 }
 0x90a   :  { %v1535_v2 = vpop.eup %1534 }
 0x90b   :  { %v1537_v3 = vpop.eup %1536  ;;  %v1037_v4 = vrot.slane %v1535_v2, 4  ;;  %1059 = vperm.xlu1 %1483, %v1535_v2  }
 0x90c   :  { %v1038_v5 = vrot.slane %v1537_v3, 4  ;;  %1063 = vperm.xlu0 %1482, %v1537_v3   ;;  %v1539_v18 = vpop.eup %1538 }
 0x90d   :  { %v1541_v20 = vpop.eup %1540 }
 0x90e   :  { %v1039_v22 = vsel %vm91_vm0, %v1037_v4, %v1038_v5  ;;  %v1043_v6 = vadd.f32 %v1539_v18, %v1038_v5 }
 0x90f   :  { %v1042_v7 = vadd.f32 %v1541_v20, %v1039_v22  ;;  %1048 = vperm.xlu1 %1483, %v1541_v20  }
 0x910   :  { %1542 = vrcp.f32 %v1043_v6 }
 0x911   :  { %1544 = vrcp.f32 %v1042_v7 }
 0x913   :  { %1053 = vperm.xlu1 %1483, %v1539_v18  }
 0x91a   :  { %v1543_v12 = vpop.eup %1542 }
 0x91b   :  { %v1545_v14 = vpop.eup %1544  ;;  %1085 = vperm.xlu1 %1483, %v1543_v12  }
 0x91c   :  { %1080 = vperm.xlu0 %1482, %v1545_v14  }
 0x98a   :  { %v1060_v15 = vpop.permute.xlu1 %1059 }
 0x98b   :  { %v1064_v31 = vpop.permute.xlu0 %1063  ;;  %v1067_v24 = vmul.f32 %v1060_v15, %v1932_v19 }
 0x98c   :  { %v1068_v17 = vmul.f32 %v1064_v31, %v1942_v26 }
 0x98d   :  { %v1071_v27 = vrot.slane %v1067_v24, 4 }
 0x98e   :  { %v1049_v23 = vpop.permute.xlu1 %1048  ;;  %v1072_v28 = vrot.slane %v1068_v17, 4 }
 0x98f   :  { %v1056_v30 = vmul.f32 %v1049_v23, %v1923_v9 }
 0x990   :  { %v1073_v33 = vsel %vm91_vm0, %v1071_v27, %v1072_v28 }
 0x991   :  { %v1076_v39 = vadd.f32 %v1073_v33, %v1056_v30 }
 0x992   :  { %v1054_v21 = vpop.permute.xlu1 %1053 }
 0x993   :  { %v1057_v29 = vmul.f32 %v1054_v21, %v1861_v32  ;;  %v1246_v32 = vld [vmem:[%s2004_s16] ss:$0 sm:$0xff]  ;;  %s1576_s16 = smov 32  }
 0x995   :  { %v1077_v34 = vadd.f32 %v1072_v28, %v1057_v29 }
 0x99a   :  { %v1086_v38 = vpop.permute.xlu1 %1085 }
 0x99b   :  { %v1089_v1 = vmul.f32 %v1086_v38, %v1077_v34  ;;  %v1081_v40 = vpop.permute.xlu0 %1080 }
 0x99c   :  { %v1088_v41 = vmul.f32 %v1081_v40, %v1076_v39 }
 0x99d   :  { %v1091_v44 = vmax.f32 %v1089_v1, 0.0 }
 0x99e   :  { %v1090_v43 = vmax.f32 %v1088_v41, 0.0 }
 0x9a0   :  { %1403 = vmatprep.mubr.msk.f32.mxu0 %vm419_vm15, %v1090_v43 }
 0x9a1   :  { %1404 = vmatmul.mubr.msk.f32.vlgmr.msra.gmra.mrb[12].mxu0 %vm419_vm15, %v1091_v44 }
 0xa74   :  { %v1405_v19 = vpop.f32.mrb[12].mxu0 }
 0xa75   :  { %v1181_v9 = vadd.f32 %v1405_v19, %v1246_v32  ;;  %v1175_v26 = vpop.f32.mrb[13].mxu0 }
 0xa76   :  { %v1176_v45 = vadd.f32 %v1246_v32, %v1175_v26 }
 0xa77   :  { %v1185_v46 = vand.u32 2147483647, %v1181_v9  ;;  %vm1193_vm0 = vcmp.ge.f32.partialorder %v1181_v9, 0.0 }
 0xa78   :  { %v1184_v47 = vand.u32 2147483647, %v1176_v45  ;;  %vm1192_vm1 = vcmp.ge.f32.partialorder %v1176_v45, 0.0 }
 0xa79   :  { %v1187_v48 = vsub.f32 0.0, %v1185_v46 }
 0xa7a   :  { %v1186_v52 = vsub.f32 0.0, %v1184_v47 }
 0xa7b   :  { %v1190_v50 = vmul.f32 1.442695, %v1187_v48 }
 0xa7c   :  { %v1188_v54 = vmul.f32 1.442695, %v1186_v52 }
 0xa7d   :  { %1546 = vpow2.f32 %v1190_v50 }
 0xa7e   :  { %1548 = vpow2.f32 %v1188_v54 }
 0xa87   :  { %v1547_v42 = vpop.eup %1546 }
 0xa88   :  { %v1549_v55 = vpop.eup %1548  ;;  %v1197_v56 = vadd.f32 1.0, %v1547_v42  ;;  %v1195_v59 = vsel %vm1193_vm0, 1.0, %v1547_v42 }
 0xa89   :  { %v1196_v57 = vadd.f32 1.0, %v1549_v55  ;;  %v1194_v51 = vsel %vm1192_vm1, 1.0, %v1549_v55 }
 0xa8a   :  { %1550 = vrcp.f32 %v1197_v56 }
 0xa8b   :  { %1552 = vrcp.f32 %v1196_v57 }
 0xa94   :  { %v1551_v58 = vpop.eup %1550 }
 0xa95   :  { %v1553_v49 = vpop.eup %1552  ;;  %v1201_v53 = vmul.f32 %v1551_v58, %v1195_v59 }
 0xa96   :  { %v1200_v60 = vmul.f32 %v1553_v49, %v1194_v51 }
 0xa97   :  { %1206 = vrot.lane.b32.xlu1 %v1201_v53, %s1576_s16 }
 0xa98   :  { %1204 = vrot.lane.b32.xlu0 %v1200_v60, %s1576_s16 }
 0xb09   :  { %v1207_v61 = vpop.permute.xlu1 %1206 }
 0xb0a   :  { %v1211_v62 = vsel %vm419_vm15, %v1091_v44, %v1207_v61  ;;  %v1205_v63 = vpop.permute.xlu0 %1204 }
 0xb0b   :  { %v1214_v36 = vsel %vm1212_vm6, %v1211_v62, 0.0  ;;  %v1210_v35 = vsel %vm419_vm15, %v1090_v43, %v1205_v63 }
 0xb0c   :  { %1216 = vst [vmem:[%s2006_s18 + $0x8] sm:$0xf] %v1214_v36  ;;  %v1213_v37 = vsel %vm1212_vm6, %v1210_v35, 0.0 }
 0xb0d   :  { %1215 = vst [vmem:[%s2006_s18] sm:$0xff] %v1213_v37 }
 0xb0e   :  { %1221 = vsyncpa [#allocation3], 1 }

</bundles_post_ra>
